<compile_context>
chip_gen: v6e
topology: v6e:2x2x1
jax: 0.10.0
libtpu: 0.0.40
codegen_flags: <defaults>
</compile_context>

<pallas_src>
import numpy as np
import jax
import jax.numpy as jnp
from jax.experimental import pallas as pl
from jax.experimental.pallas import tpu as pltpu

LANES = 128     # TPU lane width; channel dims are zero-padded to this.
K0_PAD = 16     # layer-0 taps (true K0=11) padded to one bf16 sublane group, NOT 128.


def _round_up(x, m):
    return (x + m - 1) // m * m


# ------------------------------ Pallas kernel --------------------------------
def _make_pase_kernel(plan, bpb):
    """Build the fused conv+PReLU stack kernel for a static layer plan.

    Kernel refs:  (patches0, w0, b0, a0,
                   [Wflat_l, b_l, a_l] * n_hidden,      # inputs
                   out_ref,                             # (bpb, C_last, T_last_pad)
                   scr_1 .. scr_n)                      # VMEM scratch: padded inputs
    """
    n_layers = len(plan)
    n_hidden = n_layers - 1
    c_last = plan[-1]["c_out"]

    def kernel(*refs):
        p0_ref, w0_ref, b0_ref, a0_ref = refs[:4]
        hid = refs[4:4 + 3 * n_hidden]
        out_ref = refs[4 + 3 * n_hidden]
        scrs = refs[4 + 3 * n_hidden + 1:]

        def bias_prelu(acc, b_ref, a_ref):
            acc = acc + b_ref[...]                    # (R,128) + (1,128) broadcast
            return jnp.where(acc >= 0.0, acc, a_ref[...] * acc)

        def stash(y, scr_ref, producer, consumer):
            """Write producer activations into the consumer's zero-padded scratch.

            Rows >= t_out (bias/PReLU-of-nothing garbage from the time padding)
            are masked to zero so they can never leak into later layers through
            the strided reads; the untouched scratch rows stay zero and provide
            the conv left/right zero-padding.
            """
            t_out, t_pad = producer["t_out"], producer["t_pad"]
            rows, pad = consumer["rows"], consumer["pad"]
            row = jax.lax.broadcasted_iota(jnp.int32, (t_pad, LANES), 0)
            valid = row < t_out
            scr_ref[...] = jnp.zeros_like(scr_ref)
            for b in range(bpb):
                xb = y[b * t_pad:(b + 1) * t_pad, :]
                scr_ref[pl.ds(b * rows + pad, t_pad), :] = jnp.where(valid, xb, 0.0)

        # ---- layer 0: host-im2col patches (true tap count) @ flat weights ------
        p0 = jnp.concatenate([p0_ref[b] for b in range(bpb)], axis=0)
        y = jnp.dot(p0, w0_ref[...], preferred_element_type=jnp.float32)
        y = bias_prelu(y, b0_ref, a0_ref)              # (bpb*T0_pad, 128) f32
        stash(y, scrs[0], plan[0], plan[1])

        # ---- hidden layers: strided-VMEM-read im2col + ONE matmul per layer ----
        for l in range(1, n_layers):
            lay = plan[l]
            w_ref, b_ref, a_ref = hid[3 * (l - 1): 3 * l]
            scr = scrs[l - 1]
            k, s, t_pad, rows = lay["k"], lay["stride"], lay["t_pad"], lay["rows"]
            blocks = []
            for b in range(bpb):
                taps = [scr[pl.ds(b * rows + kk, t_pad, stride=s), :]
                        for kk in range(k)]            # K strided sublane reads
                blocks.append(jnp.concatenate(taps, axis=1).astype(jnp.bfloat16))
            patches = jnp.concatenate(blocks, axis=0)  # (bpb*T_pad, K*128) bf16
            y = jnp.dot(patches, w_ref[...], preferred_element_type=jnp.float32)
            y = bias_prelu(y, b_ref, a_ref)            # (bpb*T_pad, 128) f32
            if l < n_layers - 1:
                stash(y, scrs[l], lay, plan[l + 1])
            else:
                # Final layer: channel slice (128 -> C_last) + NCW transpose
                # inside the kernel (tiny tile, XLU transpose).
                for b in range(bpb):
                    yb = y[b * t_pad:(b + 1) * t_pad, :]
                    out_ref[b] = jnp.transpose(yb)[:c_last, :]

    return kernel


# ------------------------------ host-side wrapper -----------------------------
def pase_forward(waveform, params, *, batch_per_step=None, interpret=False):
    """waveform: (B, 1, L) f32 (NCW); params: [(w, b, alpha, stride, pad), ...]."""
    waveform = waveform.astype(jnp.float32)
    B, c_in0, L = waveform.shape
    assert c_in0 == 1

    bpb = batch_per_step
    if bpb is None:
        bpb = 2 if B % 2 == 0 else 1        # >=2 rows-stacks per step when possible
    assert B % bpb == 0

    # ---------- static layer plan ----------
    plan = []
    t_in = L
    for (w, b, a, stride, pad) in params:
        c_out, c_in, k = w.shape
        t_out = (t_in + 2 * pad - k) // stride + 1
        plan.append(dict(c_out=c_out, c_in=c_in, k=k, stride=stride, pad=pad,
                         t_out=t_out, t_pad=_round_up(t_out, 16)))
        t_in = t_out
    # Per-hidden-layer scratch rows: must hold pad + previous activations AND the
    # max strided-read overhang (T_pad-1)*stride + K.
    for l in range(1, len(plan)):
        lay, prev = plan[l], plan[l - 1]
        need = max(lay["pad"] + prev["t_pad"],
                   (lay["t_pad"] - 1) * lay["stride"] + lay["k"])
        lay["rows"] = _round_up(need, 16)

    def lane_vec(v, n):
        return jnp.zeros((1, LANES), jnp.float32).at[0, :n].set(v.astype(jnp.float32))

    # ---------- layer-0 im2col in glue (true tap count, lane dim 16 not 128) ----
    lay0 = plan[0]
    w0, b0, a0, s0, p0 = params[0]
    k0 = lay0["k"]
    xp = jnp.pad(waveform[:, 0, :], ((0, 0), (p0, p0)))
    gidx = np.arange(lay0["t_out"])[:, None] * s0 + np.arange(k0)[None, :]
    patches0 = xp[:, gidx]                                            # (B, T0, K0)
    patches0 = jnp.pad(
        patches0,
        ((0, 0), (0, lay0["t_pad"] - lay0["t_out"]), (0, K0_PAD - k0))
    ).astype(jnp.bfloat16)

    w0flat = jnp.zeros((K0_PAD, LANES), jnp.float32)
    w0flat = w0flat.at[:k0, :lay0["c_out"]].set(jnp.transpose(w0[:, 0, :]))

    inputs = [patches0, w0flat.astype(jnp.bfloat16),
              lane_vec(b0, lay0["c_out"]), lane_vec(a0, lay0["c_out"])]
    in_specs = [
        pl.BlockSpec((bpb, lay0["t_pad"], K0_PAD), lambda i: (i, 0, 0)),
        pl.BlockSpec((K0_PAD, LANES), lambda i: (0, 0)),
        pl.BlockSpec((1, LANES), lambda i: (0, 0)),
        pl.BlockSpec((1, LANES), lambda i: (0, 0)),
    ]
    flops = 2 * B * lay0["t_pad"] * K0_PAD * LANES

    # ---------- hidden layers: weights stacked along the contraction dim --------
    for l in range(1, len(plan)):
        lay = plan[l]
        w, b, a, _, _ = params[l]
        k, c_in, c_out = lay["k"], lay["c_in"], lay["c_out"]
        wf = jnp.zeros((k, LANES, LANES), jnp.float32)
        wf = wf.at[:, :c_in, :c_out].set(jnp.transpose(w, (2, 1, 0)))  # [k, ci, co]
        wf = wf.reshape(k * LANES, LANES)                              # row = k*128+ci
        inputs += [wf.astype(jnp.bfloat16), lane_vec(b, c_out), lane_vec(a, c_out)]
        in_specs += [
            pl.BlockSpec((k * LANES, LANES), lambda i: (0, 0)),
            pl.BlockSpec((1, LANES), lambda i: (0, 0)),
            pl.BlockSpec((1, LANES), lambda i: (0, 0)),
        ]
        flops += 2 * B * lay["t_pad"] * k * LANES * LANES

    lay_last = plan[-1]
    out_shape = jax.ShapeDtypeStruct((B, lay_last["c_out"], lay_last["t_pad"]),
                                     jnp.float32)
    out_spec = pl.BlockSpec((bpb, lay_last["c_out"], lay_last["t_pad"]),
                            lambda i: (i, 0, 0))

    scratch_shapes = [pltpu.VMEM((bpb * plan[l]["rows"], LANES), jnp.float32)
                      for l in range(1, len(plan))]

    bytes_accessed = int(
        sum(int(np.prod(x.shape)) * x.dtype.itemsize for x in inputs)
        + B * lay_last["c_out"] * lay_last["t_pad"] * 4)

    out = pl.pallas_call(
        _make_pase_kernel(plan, bpb),
        out_shape=out_shape,
        grid_spec=pltpu.PrefetchScalarGridSpec(
            num_scalar_prefetch=0,
            grid=(B // bpb,),                       # batch chunks -> megacore shards
            in_specs=in_specs,
            out_specs=out_spec,
            scratch_shapes=scratch_shapes,
        ),
        compiler_params=pltpu.CompilerParams(
            dimension_semantics=("parallel",),
            vmem_limit_bytes=32 * 1024 * 1024,      # safe on v5e/v6e/v7x
        ),
        cost_estimate=pl.CostEstimate(
            flops=int(flops), transcendentals=0, bytes_accessed=bytes_accessed),
        interpret=interpret,
    )(*inputs)

    # Kernel already emits NCW with channels sliced; strip time padding only.
    return out[:, :, :lay_last["t_out"]]


# ------------------------------ pure-JAX reference ----------------------------
def _pase_reference(waveform, params):
    x = waveform.astype(jnp.float32)
    for (w, b, a, stride, pad) in params:
        x = jax.lax.conv_general_dilated(
            x, w, window_strides=(stride,), padding=[(pad, pad)],
            dimension_numbers=("NCH", "OIH", "NCH"))
        x = x + b[None, :, None]
        x = jnp.where(x >= 0, x, a[None, :, None] * x)
    return x


# ------------------------------ PASE-style model ------------------------------
class PASEModelPallas:
    """JAX/Pallas stand-in for PASEModel.forward (raw waveform -> frame feats)."""

    # (C_in, C_out, kernel, stride, padding) — synthetic PASE-style frontend.
    # TODO(synk): real architecture/weights come from wf_builder(config_path) +
    # load_pretrained(checkpoint_path); neither is available in-script.
    LAYER_CFG = [
        (1, 16, 11, 5, 5),
        (16, 32, 5, 4, 2),
        (32, 32, 3, 2, 1),
        (32, 64, 3, 2, 1),
    ]

    def __init__(self, key):
        self.sample_rate = 16000
        self.fps = 30
        self.frame_length = int(self.sample_rate * 0.033)
        self.params = []
        for (c_in, c_out, k, stride, pad) in self.LAYER_CFG:
            key, kw, kb = jax.random.split(key, 3)
            fan_in = c_in * k
            w = jax.random.normal(kw, (c_out, c_in, k), jnp.float32) / jnp.sqrt(
                jnp.float32(fan_in))
            b = 0.01 * jax.random.normal(kb, (c_out,), jnp.float32)
            alpha = jnp.full((c_out,), 0.25, jnp.float32)  # PReLU default slope
            self.params.append((w, b, alpha, stride, pad))

    def forward(self, waveform):
        # waveform: (B, 1, L) float32 (NCW, like the PyTorch module)
        return pase_forward(waveform.astype(jnp.float32), self.params)

    def __call__(self, waveform):
        return self.forward(waveform)


# ----------------------------------- main -------------------------------------
if __name__ == "__main__":
    key = jax.random.PRNGKey(0)
    key, k_model, k_wave = jax.random.split(key, 3)

    model = PASEModelPallas(k_model)

    B, L = 2, 800  # small waveform: 2 clips of 800 samples
    waveform = jax.random.normal(k_wave, (B, 1, L), jnp.float32)

    feats = model(waveform)
    feats = jax.block_until_ready(feats)

    assert feats.shape == (B, 64, 10), feats.shape
    assert feats.dtype == jnp.float32
    assert bool(jnp.all(jnp.isfinite(feats)))

    # Tolerance-check against an f32 pure-JAX reference (kernel uses bf16 MXU
    # inputs with f32 accumulation, so a small divergence is expected).
    ref = _pase_reference(waveform, model.params)
    np.testing.assert_allclose(np.asarray(feats), np.asarray(ref),
                               rtol=5e-2, atol=5e-2)

    print("KERNEL_OK")
</pallas_src>

<mosaic_0001>
module attributes {stable_mosaic.version = 11 : i64} {
  func.func @kernel(%arg0: i32, %arg1: memref<2x160x16xbf16, #tpu.memory_space<vmem>>, %arg2: memref<16x128xbf16, #tpu.memory_space<vmem>>, %arg3: memref<1x128xf32, #tpu.memory_space<vmem>>, %arg4: memref<1x128xf32, #tpu.memory_space<vmem>>, %arg5: memref<640x128xbf16, #tpu.memory_space<vmem>>, %arg6: memref<1x128xf32, #tpu.memory_space<vmem>>, %arg7: memref<1x128xf32, #tpu.memory_space<vmem>>, %arg8: memref<384x128xbf16, #tpu.memory_space<vmem>>, %arg9: memref<1x128xf32, #tpu.memory_space<vmem>>, %arg10: memref<1x128xf32, #tpu.memory_space<vmem>>, %arg11: memref<384x128xbf16, #tpu.memory_space<vmem>>, %arg12: memref<1x128xf32, #tpu.memory_space<vmem>>, %arg13: memref<1x128xf32, #tpu.memory_space<vmem>>, %arg14: memref<2x64x16xf32, #tpu.memory_space<vmem>>, %arg15: memref<416x128xf32, #tpu.memory_space<vmem>>, %arg16: memref<160x128xf32, #tpu.memory_space<vmem>>, %arg17: memref<96x128xf32, #tpu.memory_space<vmem>>) attributes {dimension_semantics = [#tpu.dimension_semantics<parallel>], iteration_bounds = array<i64: 1>, scalar_prefetch = 0 : i64, scratch_operands = 3 : i64, tpu.core_type = #tpu.core_type<tc>, window_params = [{transform_indices = @transform_0, window_bounds = array<i64: 2, 160, 16>}, {pipeline_mode = #tpu.pipeline_mode<synchronous>, transform_indices = @transform_1, window_bounds = array<i64: 16, 128>}, {pipeline_mode = #tpu.pipeline_mode<synchronous>, transform_indices = @transform_2, window_bounds = array<i64: 1, 128>}, {pipeline_mode = #tpu.pipeline_mode<synchronous>, transform_indices = @transform_3, window_bounds = array<i64: 1, 128>}, {pipeline_mode = #tpu.pipeline_mode<synchronous>, transform_indices = @transform_4, window_bounds = array<i64: 640, 128>}, {pipeline_mode = #tpu.pipeline_mode<synchronous>, transform_indices = @transform_5, window_bounds = array<i64: 1, 128>}, {pipeline_mode = #tpu.pipeline_mode<synchronous>, transform_indices = @transform_6, window_bounds = array<i64: 1, 128>}, {pipeline_mode = #tpu.pipeline_mode<synchronous>, transform_indices = @transform_7, window_bounds = array<i64: 384, 128>}, {pipeline_mode = #tpu.pipeline_mode<synchronous>, transform_indices = @transform_8, window_bounds = array<i64: 1, 128>}, {pipeline_mode = #tpu.pipeline_mode<synchronous>, transform_indices = @transform_9, window_bounds = array<i64: 1, 128>}, {pipeline_mode = #tpu.pipeline_mode<synchronous>, transform_indices = @transform_10, window_bounds = array<i64: 384, 128>}, {pipeline_mode = #tpu.pipeline_mode<synchronous>, transform_indices = @transform_11, window_bounds = array<i64: 1, 128>}, {pipeline_mode = #tpu.pipeline_mode<synchronous>, transform_indices = @transform_12, window_bounds = array<i64: 1, 128>}, {transform_indices = @transform_13, window_bounds = array<i64: 2, 64, 16>}]} {
    %c0 = arith.constant 0 : index
    %c0_0 = arith.constant 0 : index
    %c0_1 = arith.constant 0 : index
    %0 = vector.load %arg1[%c0, %c0_0, %c0_1] : memref<2x160x16xbf16, #tpu.memory_space<vmem>>, vector<1x160x16xbf16>
    %1 = vector.shape_cast %0 : vector<1x160x16xbf16> to vector<160x16xbf16>
    %c1 = arith.constant 1 : index
    %c0_2 = arith.constant 0 : index
    %c0_3 = arith.constant 0 : index
    %2 = vector.load %arg1[%c1, %c0_2, %c0_3] : memref<2x160x16xbf16, #tpu.memory_space<vmem>>, vector<1x160x16xbf16>
    %3 = vector.shape_cast %2 : vector<1x160x16xbf16> to vector<160x16xbf16>
    %4 = tpu.concatenate %1, %3 in 0 : vector<160x16xbf16>, vector<160x16xbf16> -> vector<320x16xbf16>
    %c0_4 = arith.constant 0 : index
    %c0_5 = arith.constant 0 : index
    %5 = vector.load %arg2[%c0_4, %c0_5] : memref<16x128xbf16, #tpu.memory_space<vmem>>, vector<16x128xbf16>
    %cst = arith.constant dense<0.000000e+00> : vector<320x128xf32>
    %6 = tpu.matmul %4, %5, %cst {dimension_numbers = #tpu.dot_dimension_numbers<[1], [0], [0], [1], [0, 0, 1, 1], [], []>} : vector<320x16xbf16>, vector<16x128xbf16>, vector<320x128xf32> -> vector<320x128xf32>
    %c0_6 = arith.constant 0 : index
    %c0_7 = arith.constant 0 : index
    %7 = vector.load %arg3[%c0_6, %c0_7] : memref<1x128xf32, #tpu.memory_space<vmem>>, vector<1x128xf32>
    %8 = vector.broadcast %7 : vector<1x128xf32> to vector<320x128xf32>
    %9 = arith.addf %6, %8 : vector<320x128xf32>
    %cst_8 = arith.constant 0.000000e+00 : f32
    %10 = vector.broadcast %cst_8 : f32 to vector<320x128xf32>
    %11 = arith.cmpf oge, %9, %10 : vector<320x128xf32>
    %c0_9 = arith.constant 0 : index
    %c0_10 = arith.constant 0 : index
    %12 = vector.load %arg4[%c0_9, %c0_10] : memref<1x128xf32, #tpu.memory_space<vmem>>, vector<1x128xf32>
    %13 = vector.broadcast %12 : vector<1x128xf32> to vector<320x128xf32>
    %14 = arith.mulf %13, %9 : vector<320x128xf32>
    %15 = arith.select %11, %9, %14 : vector<320x128xi1>, vector<320x128xf32>
    %16 = tpu.iota {dimensions = array<i32: 0>} : vector<160x128xi32>
    %c160_i32 = arith.constant 160 : i32
    %17 = vector.broadcast %c160_i32 : i32 to vector<160x128xi32>
    %18 = arith.cmpi slt, %16, %17 : vector<160x128xi32>
    %cst_11 = arith.constant 0.000000e+00 : f32
    %19 = vector.broadcast %cst_11 : f32 to vector<416x128xf32>
    %c0_12 = arith.constant 0 : index
    %c0_13 = arith.constant 0 : index
    %20 = vector.load %arg15[%c0_12, %c0_13] : memref<416x128xf32, #tpu.memory_space<vmem>>, vector<416x128xf32>
    tpu.vector_store %arg15[%c0_12, %c0_13], %19 {strides = array<i32>} : memref<416x128xf32, #tpu.memory_space<vmem>>, vector<416x128xf32>,
    %21 = vector.extract_strided_slice %15 {offsets = [0, 0], sizes = [160, 128], strides = [1, 1]} : vector<320x128xf32> to vector<160x128xf32>
    %cst_14 = arith.constant 0.000000e+00 : f32
    %22 = vector.broadcast %cst_14 : f32 to vector<160x128xf32>
    %23 = arith.select %18, %21, %22 : vector<160x128xi1>, vector<160x128xf32>
    %c2 = arith.constant 2 : index
    %c0_15 = arith.constant 0 : index
    %24 = vector.load %arg15[%c2, %c0_15] : memref<416x128xf32, #tpu.memory_space<vmem>>, vector<160x128xf32>
    tpu.vector_store %arg15[%c2, %c0_15], %23 {strides = array<i32>} : memref<416x128xf32, #tpu.memory_space<vmem>>, vector<160x128xf32>,
    %25 = vector.extract_strided_slice %15 {offsets = [160, 0], sizes = [160, 128], strides = [1, 1]} : vector<320x128xf32> to vector<160x128xf32>
    %cst_16 = arith.constant 0.000000e+00 : f32
    %26 = vector.broadcast %cst_16 : f32 to vector<160x128xf32>
    %27 = arith.select %18, %25, %26 : vector<160x128xi1>, vector<160x128xf32>
    %c210 = arith.constant 210 : index
    %c0_17 = arith.constant 0 : index
    %28 = vector.load %arg15[%c210, %c0_17] : memref<416x128xf32, #tpu.memory_space<vmem>>, vector<160x128xf32>
    tpu.vector_store %arg15[%c210, %c0_17], %27 {strides = array<i32>} : memref<416x128xf32, #tpu.memory_space<vmem>>, vector<160x128xf32>,
    %c0_18 = arith.constant 0 : index
    %c0_19 = arith.constant 0 : index
    %29 = tpu.strided_load %arg15[%c0_18, %c0_19] {strides = array<i32: 4, 1>} : memref<416x128xf32, #tpu.memory_space<vmem>>, vector<48x128xf32>
    %c1_20 = arith.constant 1 : index
    %c0_21 = arith.constant 0 : index
    %30 = tpu.strided_load %arg15[%c1_20, %c0_21] {strides = array<i32: 4, 1>} : memref<416x128xf32, #tpu.memory_space<vmem>>, vector<48x128xf32>
    %c2_22 = arith.constant 2 : index
    %c0_23 = arith.constant 0 : index
    %31 = tpu.strided_load %arg15[%c2_22, %c0_23] {strides = array<i32: 4, 1>} : memref<416x128xf32, #tpu.memory_space<vmem>>, vector<48x128xf32>
    %c3 = arith.constant 3 : index
    %c0_24 = arith.constant 0 : index
    %32 = tpu.strided_load %arg15[%c3, %c0_24] {strides = array<i32: 4, 1>} : memref<416x128xf32, #tpu.memory_space<vmem>>, vector<48x128xf32>
    %c4 = arith.constant 4 : index
    %c0_25 = arith.constant 0 : index
    %33 = tpu.strided_load %arg15[%c4, %c0_25] {strides = array<i32: 4, 1>} : memref<416x128xf32, #tpu.memory_space<vmem>>, vector<48x128xf32>
    %34 = tpu.concatenate %29, %30, %31, %32, %33 in 1 : vector<48x128xf32>, vector<48x128xf32>, vector<48x128xf32>, vector<48x128xf32>, vector<48x128xf32> -> vector<48x640xf32>
    %35 = arith.truncf %34 : vector<48x640xf32> to vector<48x640xbf16>
    %c208 = arith.constant 208 : index
    %c0_26 = arith.constant 0 : index
    %36 = tpu.strided_load %arg15[%c208, %c0_26] {strides = array<i32: 4, 1>} : memref<416x128xf32, #tpu.memory_space<vmem>>, vector<48x128xf32>
    %c209 = arith.constant 209 : index
    %c0_27 = arith.constant 0 : index
    %37 = tpu.strided_load %arg15[%c209, %c0_27] {strides = array<i32: 4, 1>} : memref<416x128xf32, #tpu.memory_space<vmem>>, vector<48x128xf32>
    %c210_28 = arith.constant 210 : index
    %c0_29 = arith.constant 0 : index
    %38 = tpu.strided_load %arg15[%c210_28, %c0_29] {strides = array<i32: 4, 1>} : memref<416x128xf32, #tpu.memory_space<vmem>>, vector<48x128xf32>
    %c211 = arith.constant 211 : index
    %c0_30 = arith.constant 0 : index
    %39 = tpu.strided_load %arg15[%c211, %c0_30] {strides = array<i32: 4, 1>} : memref<416x128xf32, #tpu.memory_space<vmem>>, vector<48x128xf32>
    %c212 = arith.constant 212 : index
    %c0_31 = arith.constant 0 : index
    %40 = tpu.strided_load %arg15[%c212, %c0_31] {strides = array<i32: 4, 1>} : memref<416x128xf32, #tpu.memory_space<vmem>>, vector<48x128xf32>
    %41 = tpu.concatenate %36, %37, %38, %39, %40 in 1 : vector<48x128xf32>, vector<48x128xf32>, vector<48x128xf32>, vector<48x128xf32>, vector<48x128xf32> -> vector<48x640xf32>
    %42 = arith.truncf %41 : vector<48x640xf32> to vector<48x640xbf16>
    %43 = tpu.concatenate %35, %42 in 0 : vector<48x640xbf16>, vector<48x640xbf16> -> vector<96x640xbf16>
    %c0_32 = arith.constant 0 : index
    %c0_33 = arith.constant 0 : index
    %44 = vector.load %arg5[%c0_32, %c0_33] : memref<640x128xbf16, #tpu.memory_space<vmem>>, vector<640x128xbf16>
    %cst_34 = arith.constant dense<0.000000e+00> : vector<96x128xf32>
    %45 = tpu.matmul %43, %44, %cst_34 {dimension_numbers = #tpu.dot_dimension_numbers<[1], [0], [0], [1], [0, 0, 1, 1], [], []>} : vector<96x640xbf16>, vector<640x128xbf16>, vector<96x128xf32> -> vector<96x128xf32>
    %c0_35 = arith.constant 0 : index
    %c0_36 = arith.constant 0 : index
    %46 = vector.load %arg6[%c0_35, %c0_36] : memref<1x128xf32, #tpu.memory_space<vmem>>, vector<1x128xf32>
    %47 = vector.broadcast %46 : vector<1x128xf32> to vector<96x128xf32>
    %48 = arith.addf %45, %47 : vector<96x128xf32>
    %cst_37 = arith.constant 0.000000e+00 : f32
    %49 = vector.broadcast %cst_37 : f32 to vector<96x128xf32>
    %50 = arith.cmpf oge, %48, %49 : vector<96x128xf32>
    %c0_38 = arith.constant 0 : index
    %c0_39 = arith.constant 0 : index
    %51 = vector.load %arg7[%c0_38, %c0_39] : memref<1x128xf32, #tpu.memory_space<vmem>>, vector<1x128xf32>
    %52 = vector.broadcast %51 : vector<1x128xf32> to vector<96x128xf32>
    %53 = arith.mulf %52, %48 : vector<96x128xf32>
    %54 = arith.select %50, %48, %53 : vector<96x128xi1>, vector<96x128xf32>
    %55 = tpu.iota {dimensions = array<i32: 0>} : vector<48x128xi32>
    %c40_i32 = arith.constant 40 : i32
    %56 = vector.broadcast %c40_i32 : i32 to vector<48x128xi32>
    %57 = arith.cmpi slt, %55, %56 : vector<48x128xi32>
    %cst_40 = arith.constant 0.000000e+00 : f32
    %58 = vector.broadcast %cst_40 : f32 to vector<160x128xf32>
    %c0_41 = arith.constant 0 : index
    %c0_42 = arith.constant 0 : index
    %59 = vector.load %arg16[%c0_41, %c0_42] : memref<160x128xf32, #tpu.memory_space<vmem>>, vector<160x128xf32>
    tpu.vector_store %arg16[%c0_41, %c0_42], %58 {strides = array<i32>} : memref<160x128xf32, #tpu.memory_space<vmem>>, vector<160x128xf32>,
    %60 = vector.extract_strided_slice %54 {offsets = [0, 0], sizes = [48, 128], strides = [1, 1]} : vector<96x128xf32> to vector<48x128xf32>
    %cst_43 = arith.constant 0.000000e+00 : f32
    %61 = vector.broadcast %cst_43 : f32 to vector<48x128xf32>
    %62 = arith.select %57, %60, %61 : vector<48x128xi1>, vector<48x128xf32>
    %c1_44 = arith.constant 1 : index
    %c0_45 = arith.constant 0 : index
    %63 = vector.load %arg16[%c1_44, %c0_45] : memref<160x128xf32, #tpu.memory_space<vmem>>, vector<48x128xf32>
    tpu.vector_store %arg16[%c1_44, %c0_45], %62 {strides = array<i32>} : memref<160x128xf32, #tpu.memory_space<vmem>>, vector<48x128xf32>,
    %64 = vector.extract_strided_slice %54 {offsets = [48, 0], sizes = [48, 128], strides = [1, 1]} : vector<96x128xf32> to vector<48x128xf32>
    %cst_46 = arith.constant 0.000000e+00 : f32
    %65 = vector.broadcast %cst_46 : f32 to vector<48x128xf32>
    %66 = arith.select %57, %64, %65 : vector<48x128xi1>, vector<48x128xf32>
    %c81 = arith.constant 81 : index
    %c0_47 = arith.constant 0 : index
    %67 = vector.load %arg16[%c81, %c0_47] : memref<160x128xf32, #tpu.memory_space<vmem>>, vector<48x128xf32>
    tpu.vector_store %arg16[%c81, %c0_47], %66 {strides = array<i32>} : memref<160x128xf32, #tpu.memory_space<vmem>>, vector<48x128xf32>,
    %c0_48 = arith.constant 0 : index
    %c0_49 = arith.constant 0 : index
    %68 = tpu.strided_load %arg16[%c0_48, %c0_49] {strides = array<i32: 2, 1>} : memref<160x128xf32, #tpu.memory_space<vmem>>, vector<32x128xf32>
    %c1_50 = arith.constant 1 : index
    %c0_51 = arith.constant 0 : index
    %69 = tpu.strided_load %arg16[%c1_50, %c0_51] {strides = array<i32: 2, 1>} : memref<160x128xf32, #tpu.memory_space<vmem>>, vector<32x128xf32>
    %c2_52 = arith.constant 2 : index
    %c0_53 = arith.constant 0 : index
    %70 = tpu.strided_load %arg16[%c2_52, %c0_53] {strides = array<i32: 2, 1>} : memref<160x128xf32, #tpu.memory_space<vmem>>, vector<32x128xf32>
    %71 = tpu.concatenate %68, %69, %70 in 1 : vector<32x128xf32>, vector<32x128xf32>, vector<32x128xf32> -> vector<32x384xf32>
    %72 = arith.truncf %71 : vector<32x384xf32> to vector<32x384xbf16>
    %c80 = arith.constant 80 : index
    %c0_54 = arith.constant 0 : index
    %73 = tpu.strided_load %arg16[%c80, %c0_54] {strides = array<i32: 2, 1>} : memref<160x128xf32, #tpu.memory_space<vmem>>, vector<32x128xf32>
    %c81_55 = arith.constant 81 : index
    %c0_56 = arith.constant 0 : index
    %74 = tpu.strided_load %arg16[%c81_55, %c0_56] {strides = array<i32: 2, 1>} : memref<160x128xf32, #tpu.memory_space<vmem>>, vector<32x128xf32>
    %c82 = arith.constant 82 : index
    %c0_57 = arith.constant 0 : index
    %75 = tpu.strided_load %arg16[%c82, %c0_57] {strides = array<i32: 2, 1>} : memref<160x128xf32, #tpu.memory_space<vmem>>, vector<32x128xf32>
    %76 = tpu.concatenate %73, %74, %75 in 1 : vector<32x128xf32>, vector<32x128xf32>, vector<32x128xf32> -> vector<32x384xf32>
    %77 = arith.truncf %76 : vector<32x384xf32> to vector<32x384xbf16>
    %78 = tpu.concatenate %72, %77 in 0 : vector<32x384xbf16>, vector<32x384xbf16> -> vector<64x384xbf16>
    %c0_58 = arith.constant 0 : index
    %c0_59 = arith.constant 0 : index
    %79 = vector.load %arg8[%c0_58, %c0_59] : memref<384x128xbf16, #tpu.memory_space<vmem>>, vector<384x128xbf16>
    %cst_60 = arith.constant dense<0.000000e+00> : vector<64x128xf32>
    %80 = tpu.matmul %78, %79, %cst_60 {dimension_numbers = #tpu.dot_dimension_numbers<[1], [0], [0], [1], [0, 0, 1, 1], [], []>} : vector<64x384xbf16>, vector<384x128xbf16>, vector<64x128xf32> -> vector<64x128xf32>
    %c0_61 = arith.constant 0 : index
    %c0_62 = arith.constant 0 : index
    %81 = vector.load %arg9[%c0_61, %c0_62] : memref<1x128xf32, #tpu.memory_space<vmem>>, vector<1x128xf32>
    %82 = vector.broadcast %81 : vector<1x128xf32> to vector<64x128xf32>
    %83 = arith.addf %80, %82 : vector<64x128xf32>
    %cst_63 = arith.constant 0.000000e+00 : f32
    %84 = vector.broadcast %cst_63 : f32 to vector<64x128xf32>
    %85 = arith.cmpf oge, %83, %84 : vector<64x128xf32>
    %c0_64 = arith.constant 0 : index
    %c0_65 = arith.constant 0 : index
    %86 = vector.load %arg10[%c0_64, %c0_65] : memref<1x128xf32, #tpu.memory_space<vmem>>, vector<1x128xf32>
    %87 = vector.broadcast %86 : vector<1x128xf32> to vector<64x128xf32>
    %88 = arith.mulf %87, %83 : vector<64x128xf32>
    %89 = arith.select %85, %83, %88 : vector<64x128xi1>, vector<64x128xf32>
    %90 = tpu.iota {dimensions = array<i32: 0>} : vector<32x128xi32>
    %c20_i32 = arith.constant 20 : i32
    %91 = vector.broadcast %c20_i32 : i32 to vector<32x128xi32>
    %92 = arith.cmpi slt, %90, %91 : vector<32x128xi32>
    %cst_66 = arith.constant 0.000000e+00 : f32
    %93 = vector.broadcast %cst_66 : f32 to vector<96x128xf32>
    %c0_67 = arith.constant 0 : index
    %c0_68 = arith.constant 0 : index
    %94 = vector.load %arg17[%c0_67, %c0_68] : memref<96x128xf32, #tpu.memory_space<vmem>>, vector<96x128xf32>
    tpu.vector_store %arg17[%c0_67, %c0_68], %93 {strides = array<i32>} : memref<96x128xf32, #tpu.memory_space<vmem>>, vector<96x128xf32>,
    %95 = vector.extract_strided_slice %89 {offsets = [0, 0], sizes = [32, 128], strides = [1, 1]} : vector<64x128xf32> to vector<32x128xf32>
    %cst_69 = arith.constant 0.000000e+00 : f32
    %96 = vector.broadcast %cst_69 : f32 to vector<32x128xf32>
    %97 = arith.select %92, %95, %96 : vector<32x128xi1>, vector<32x128xf32>
    %c1_70 = arith.constant 1 : index
    %c0_71 = arith.constant 0 : index
    %98 = vector.load %arg17[%c1_70, %c0_71] : memref<96x128xf32, #tpu.memory_space<vmem>>, vector<32x128xf32>
    tpu.vector_store %arg17[%c1_70, %c0_71], %97 {strides = array<i32>} : memref<96x128xf32, #tpu.memory_space<vmem>>, vector<32x128xf32>,
    %99 = vector.extract_strided_slice %89 {offsets = [32, 0], sizes = [32, 128], strides = [1, 1]} : vector<64x128xf32> to vector<32x128xf32>
    %cst_72 = arith.constant 0.000000e+00 : f32
    %100 = vector.broadcast %cst_72 : f32 to vector<32x128xf32>
    %101 = arith.select %92, %99, %100 : vector<32x128xi1>, vector<32x128xf32>
    %c49 = arith.constant 49 : index
    %c0_73 = arith.constant 0 : index
    %102 = vector.load %arg17[%c49, %c0_73] : memref<96x128xf32, #tpu.memory_space<vmem>>, vector<32x128xf32>
    tpu.vector_store %arg17[%c49, %c0_73], %101 {strides = array<i32>} : memref<96x128xf32, #tpu.memory_space<vmem>>, vector<32x128xf32>,
    %c0_74 = arith.constant 0 : index
    %c0_75 = arith.constant 0 : index
    %103 = tpu.strided_load %arg17[%c0_74, %c0_75] {strides = array<i32: 2, 1>} : memref<96x128xf32, #tpu.memory_space<vmem>>, vector<16x128xf32>
    %c1_76 = arith.constant 1 : index
    %c0_77 = arith.constant 0 : index
    %104 = tpu.strided_load %arg17[%c1_76, %c0_77] {strides = array<i32: 2, 1>} : memref<96x128xf32, #tpu.memory_space<vmem>>, vector<16x128xf32>
    %c2_78 = arith.constant 2 : index
    %c0_79 = arith.constant 0 : index
    %105 = tpu.strided_load %arg17[%c2_78, %c0_79] {strides = array<i32: 2, 1>} : memref<96x128xf32, #tpu.memory_space<vmem>>, vector<16x128xf32>
    %106 = tpu.concatenate %103, %104, %105 in 1 : vector<16x128xf32>, vector<16x128xf32>, vector<16x128xf32> -> vector<16x384xf32>
    %107 = arith.truncf %106 : vector<16x384xf32> to vector<16x384xbf16>
    %c48 = arith.constant 48 : index
    %c0_80 = arith.constant 0 : index
    %108 = tpu.strided_load %arg17[%c48, %c0_80] {strides = array<i32: 2, 1>} : memref<96x128xf32, #tpu.memory_space<vmem>>, vector<16x128xf32>
    %c49_81 = arith.constant 49 : index
    %c0_82 = arith.constant 0 : index
    %109 = tpu.strided_load %arg17[%c49_81, %c0_82] {strides = array<i32: 2, 1>} : memref<96x128xf32, #tpu.memory_space<vmem>>, vector<16x128xf32>
    %c50 = arith.constant 50 : index
    %c0_83 = arith.constant 0 : index
    %110 = tpu.strided_load %arg17[%c50, %c0_83] {strides = array<i32: 2, 1>} : memref<96x128xf32, #tpu.memory_space<vmem>>, vector<16x128xf32>
    %111 = tpu.concatenate %108, %109, %110 in 1 : vector<16x128xf32>, vector<16x128xf32>, vector<16x128xf32> -> vector<16x384xf32>
    %112 = arith.truncf %111 : vector<16x384xf32> to vector<16x384xbf16>
    %113 = tpu.concatenate %107, %112 in 0 : vector<16x384xbf16>, vector<16x384xbf16> -> vector<32x384xbf16>
    %c0_84 = arith.constant 0 : index
    %c0_85 = arith.constant 0 : index
    %114 = vector.load %arg11[%c0_84, %c0_85] : memref<384x128xbf16, #tpu.memory_space<vmem>>, vector<384x128xbf16>
    %cst_86 = arith.constant dense<0.000000e+00> : vector<32x128xf32>
    %115 = tpu.matmul %113, %114, %cst_86 {dimension_numbers = #tpu.dot_dimension_numbers<[1], [0], [0], [1], [0, 0, 1, 1], [], []>} : vector<32x384xbf16>, vector<384x128xbf16>, vector<32x128xf32> -> vector<32x128xf32>
    %c0_87 = arith.constant 0 : index
    %c0_88 = arith.constant 0 : index
    %116 = vector.load %arg12[%c0_87, %c0_88] : memref<1x128xf32, #tpu.memory_space<vmem>>, vector<1x128xf32>
    %117 = vector.broadcast %116 : vector<1x128xf32> to vector<32x128xf32>
    %118 = arith.addf %115, %117 : vector<32x128xf32>
    %cst_89 = arith.constant 0.000000e+00 : f32
    %119 = vector.broadcast %cst_89 : f32 to vector<32x128xf32>
    %120 = arith.cmpf oge, %118, %119 : vector<32x128xf32>
    %c0_90 = arith.constant 0 : index
    %c0_91 = arith.constant 0 : index
    %121 = vector.load %arg13[%c0_90, %c0_91] : memref<1x128xf32, #tpu.memory_space<vmem>>, vector<1x128xf32>
    %122 = vector.broadcast %121 : vector<1x128xf32> to vector<32x128xf32>
    %123 = arith.mulf %122, %118 : vector<32x128xf32>
    %124 = arith.select %120, %118, %123 : vector<32x128xi1>, vector<32x128xf32>
    %125 = vector.extract_strided_slice %124 {offsets = [0, 0], sizes = [16, 128], strides = [1, 1]} : vector<32x128xf32> to vector<16x128xf32>
    %126 = tpu.transpose %125, [1, 0] : vector<16x128xf32> -> vector<128x16xf32>
    %127 = vector.extract_strided_slice %126 {offsets = [0, 0], sizes = [64, 16], strides = [1, 1]} : vector<128x16xf32> to vector<64x16xf32>
    %c0_92 = arith.constant 0 : index
    %c0_93 = arith.constant 0 : index
    %c0_94 = arith.constant 0 : index
    %128 = vector.load %arg14[%c0_92, %c0_93, %c0_94] : memref<2x64x16xf32, #tpu.memory_space<vmem>>, vector<1x64x16xf32>
    %129 = vector.shape_cast %128 : vector<1x64x16xf32> to vector<64x16xf32>
    %130 = vector.shape_cast %127 : vector<64x16xf32> to vector<1x64x16xf32>
    tpu.vector_store %arg14[%c0_92, %c0_93, %c0_94], %130 {strides = array<i32>} : memref<2x64x16xf32, #tpu.memory_space<vmem>>, vector<1x64x16xf32>,
    %131 = vector.extract_strided_slice %124 {offsets = [16, 0], sizes = [16, 128], strides = [1, 1]} : vector<32x128xf32> to vector<16x128xf32>
    %132 = tpu.transpose %131, [1, 0] : vector<16x128xf32> -> vector<128x16xf32>
    %133 = vector.extract_strided_slice %132 {offsets = [0, 0], sizes = [64, 16], strides = [1, 1]} : vector<128x16xf32> to vector<64x16xf32>
    %c1_95 = arith.constant 1 : index
    %c0_96 = arith.constant 0 : index
    %c0_97 = arith.constant 0 : index
    %134 = vector.load %arg14[%c1_95, %c0_96, %c0_97] : memref<2x64x16xf32, #tpu.memory_space<vmem>>, vector<1x64x16xf32>
    %135 = vector.shape_cast %134 : vector<1x64x16xf32> to vector<64x16xf32>
    %136 = vector.shape_cast %133 : vector<64x16xf32> to vector<1x64x16xf32>
    tpu.vector_store %arg14[%c1_95, %c0_96, %c0_97], %136 {strides = array<i32>} : memref<2x64x16xf32, #tpu.memory_space<vmem>>, vector<1x64x16xf32>,
    return
  }
  func.func @transform_0(%arg0: i32) -> (i32, i32, i32) {
    %c0_i32 = arith.constant 0 : i32
    %c0_i32_0 = arith.constant 0 : i32
    %c0_i32_1 = arith.constant 0 : i32
    return %arg0, %c0_i32, %c0_i32_0 : i32, i32, i32
  }
  func.func @transform_1(%arg0: i32) -> (i32, i32) {
    %c0_i32 = arith.constant 0 : i32
    %c0_i32_0 = arith.constant 0 : i32
    %c0_i32_1 = arith.constant 0 : i32
    return %c0_i32, %c0_i32_0 : i32, i32
  }
  func.func @transform_2(%arg0: i32) -> (i32, i32) {
    %c0_i32 = arith.constant 0 : i32
    %c0_i32_0 = arith.constant 0 : i32
    %c0_i32_1 = arith.constant 0 : i32
    return %c0_i32, %c0_i32_0 : i32, i32
  }
  func.func @transform_3(%arg0: i32) -> (i32, i32) {
    %c0_i32 = arith.constant 0 : i32
    %c0_i32_0 = arith.constant 0 : i32
    %c0_i32_1 = arith.constant 0 : i32
    return %c0_i32, %c0_i32_0 : i32, i32
  }
  func.func @transform_4(%arg0: i32) -> (i32, i32) {
    %c0_i32 = arith.constant 0 : i32
    %c0_i32_0 = arith.constant 0 : i32
    %c0_i32_1 = arith.constant 0 : i32
    return %c0_i32, %c0_i32_0 : i32, i32
  }
  func.func @transform_5(%arg0: i32) -> (i32, i32) {
    %c0_i32 = arith.constant 0 : i32
    %c0_i32_0 = arith.constant 0 : i32
    %c0_i32_1 = arith.constant 0 : i32
    return %c0_i32, %c0_i32_0 : i32, i32
  }
  func.func @transform_6(%arg0: i32) -> (i32, i32) {
    %c0_i32 = arith.constant 0 : i32
    %c0_i32_0 = arith.constant 0 : i32
    %c0_i32_1 = arith.constant 0 : i32
    return %c0_i32, %c0_i32_0 : i32, i32
  }
  func.func @transform_7(%arg0: i32) -> (i32, i32) {
    %c0_i32 = arith.constant 0 : i32
    %c0_i32_0 = arith.constant 0 : i32
    %c0_i32_1 = arith.constant 0 : i32
    return %c0_i32, %c0_i32_0 : i32, i32
  }
  func.func @transform_8(%arg0: i32) -> (i32, i32) {
    %c0_i32 = arith.constant 0 : i32
    %c0_i32_0 = arith.constant 0 : i32
    %c0_i32_1 = arith.constant 0 : i32
    return %c0_i32, %c0_i32_0 : i32, i32
  }
  func.func @transform_9(%arg0: i32) -> (i32, i32) {
    %c0_i32 = arith.constant 0 : i32
    %c0_i32_0 = arith.constant 0 : i32
    %c0_i32_1 = arith.constant 0 : i32
    return %c0_i32, %c0_i32_0 : i32, i32
  }
  func.func @transform_10(%arg0: i32) -> (i32, i32) {
    %c0_i32 = arith.constant 0 : i32
    %c0_i32_0 = arith.constant 0 : i32
    %c0_i32_1 = arith.constant 0 : i32
    return %c0_i32, %c0_i32_0 : i32, i32
  }
  func.func @transform_11(%arg0: i32) -> (i32, i32) {
    %c0_i32 = arith.constant 0 : i32
    %c0_i32_0 = arith.constant 0 : i32
    %c0_i32_1 = arith.constant 0 : i32
    return %c0_i32, %c0_i32_0 : i32, i32
  }
  func.func @transform_12(%arg0: i32) -> (i32, i32) {
    %c0_i32 = arith.constant 0 : i32
    %c0_i32_0 = arith.constant 0 : i32
    %c0_i32_1 = arith.constant 0 : i32
    return %c0_i32, %c0_i32_0 : i32, i32
  }
  func.func @transform_13(%arg0: i32) -> (i32, i32, i32) {
    %c0_i32 = arith.constant 0 : i32
    %c0_i32_0 = arith.constant 0 : i32
    %c0_i32_1 = arith.constant 0 : i32
    return %arg0, %c0_i32, %c0_i32_0 : i32, i32, i32
  }
}

</mosaic_0001>

<bundles_post_ra>
// kernel: tpu_custom_call.1
= control target key start
LH: loop header
LB: loop body
LE: loop exit
PB: predicated region body
PF: predicated region fallthrough
CT: control target
= control target key end

     0   :  { %18 = vsyncpa [#allocation6], 0  ;;  %s3724_s0 = inlined_call_operand.vmem [shape: bf16[2,160,16], index: 0, kind: input, shape index: {}]   ;;  %s3725_s1 = inlined_call_operand.vmem [shape: bf16[16,128], index: 1, kind: input, shape index: {}]   ;;  %s3726_s2 = inlined_call_operand.vmem [shape: f32[1,128], index: 2, kind: input, shape index: {}]   ;;  %s3727_s3 = inlined_call_operand.vmem [shape: f32[1,128], index: 3, kind: input, shape index: {}]   ;;  %s3728_s4 = inlined_call_operand.hbm [shape: bf16[640,128], index: 4, kind: input, shape index: {}]   ;;  %s3729_s5 = inlined_call_operand.vmem [shape: f32[1,128], index: 5, kind: input, shape index: {}]   ;;  %s3730_s6 = inlined_call_operand.vmem [shape: f32[1,128], index: 6, kind: input, shape index: {}]   ;;  %s3731_s7 = inlined_call_operand.vmem [shape: bf16[384,128], index: 7, kind: input, shape index: {}]   ;;  %s3732_s8 = inlined_call_operand.vmem [shape: f32[1,128], index: 8, kind: input, shape index: {}]   ;;  %s3733_s9 = inlined_call_operand.vmem [shape: f32[1,128], index: 9, kind: input, shape index: {}]   ;;  %s3734_s10 = inlined_call_operand.hbm [shape: bf16[384,128], index: 10, kind: input, shape index: {}]   ;;  %s3735_s11 = inlined_call_operand.vmem [shape: f32[1,128], index: 11, kind: input, shape index: {}]   ;;  %s3736_s12 = inlined_call_operand.vmem [shape: f32[1,128], index: 12, kind: input, shape index: {}]   ;;  %s3737_s13 = inlined_call_operand.vmem [shape: f32[2,64,16], index: 13, kind: output, shape index: {}]  }
   0x1   :  { %19 = vsyncpa [#allocation8], 0  ;;  %s3144_s25 = smov [#allocation5]  }
   0x2   :  { %s33_s26 = sshll.u32 %s3144_s25, 4  ;;  %s34_s26 = int_to_ptr.vmem [resolvable:$true] %s33_s26 }
   0x3   :  { %s3108_s27 = scalar_lea.vmem %s34_s26, 5120  ;;  %p3113_p1 = scmp.lt.s32.totalorder %s34_s26, %s34_s26 }
   0x4   :  { %p3109_p0 = scmp.ne.s32.totalorder %s34_s26, %s3108_s27  ;;  %p3114_p2 = scmp.lt.s32.totalorder %s3108_s27, %s3108_s27 }
   0x6   :  { %p3115_p3 = por %p3114_p2, %p3113_p1 }
   0x8   :  { %p3116_p4 = pnand %p3115_p3, %p3109_p0 }
   0xa   :  { %3119 = shalt.err (!%p3116_p4)
}
   0xb   :  { %s3145_s28 = smov 64   ;;  %s3146_s29 = smov 4  }
   0xc   :  { %39 = dma.hbm_to_vmem [thread:$0]  %s3728_s4, 5120, %s34_s26, [#allocation6], %s3145_s28, %s3145_s28, %s3146_s29  }
   0xd   :  { %s3147_s15 = smov [#allocation7]  }
   0xe   :  { %s55_s16 = sshll.u32 %s3147_s15, 4  ;;  %s56_s16 = int_to_ptr.vmem [resolvable:$true] %s55_s16 }
   0xf   :  { %s3128_s17 = scalar_lea.vmem %s56_s16, 3072  ;;  %p3133_p6 = scmp.lt.s32.totalorder %s56_s16, %s56_s16 }
  0x10   :  { %p3129_p5 = scmp.ne.s32.totalorder %s56_s16, %s3128_s17  ;;  %p3134_p7 = scmp.lt.s32.totalorder %s3128_s17, %s3128_s17 }
  0x12   :  { %p3135_p8 = por %p3134_p7, %p3133_p6 }
  0x14   :  { %p3136_p9 = pnand %p3135_p8, %p3129_p5 }
  0x16   :  { %3139 = shalt.err (!%p3136_p9)
}
  0x17   :  { %61 = dma.hbm_to_vmem [thread:$0]  %s3734_s10, 3072, %s56_s16, [#allocation8], %s3145_s28, %s3145_s28, %s3146_s29  }
  0x18   :  { %3140 = dma.done.wait [#allocation6], 5120  }
  0x19   :  { %3141 = vsyncadd [#allocation6], 4294962176 }
  0x1a   :  { %3142 = dma.done.wait [#allocation8], 3072  }
  0x1b   :  { %3143 = vsyncadd [#allocation8], 4294964224  ;;  %v3148_v0 = vmov 0.0   ;;  %v2991_v1 = vld [vmem:[%s3725_s1] sm:$0xff]   ;;  %vm229_vm0 = vcmask 130048   ;;  %v2993_v3 = vld [vmem:[%s3724_s0 + $0x8] sm:$0xff]  }
  0x1c   :  { %651 = vst [vmem:[#allocation2] sm:$0xff] %v3148_v0  ;;  %652 = vst [vmem:[#allocation2 + $0x8] sm:$0xff] %v3148_v0  ;;  %v2992_v2 = vld [vmem:[%s3724_s0] sm:$0xff]   ;;  %2872 = vmatprep.subr.bf16.mxu0 %v2991_v1  ;;  %v2994_v4 = vld [vmem:[%s3724_s0 + $0x10] sm:$0xff]  }
  0x1d   :  { %653 = vst [vmem:[#allocation2 + $0x10] sm:$0xff] %v3148_v0  ;;  %654 = vst [vmem:[#allocation2 + $0x18] sm:$0xff] %v3148_v0  ;;  %2873 = vmatpush3.bf16.msra.mxu0 %v2991_v1  ;;  %2874 = vmatprep.mubr.msk.bf16.mxu0 %vm229_vm0, %v2992_v2  ;;  %v2995_v5 = vld [vmem:[%s3724_s0 + $0x18] sm:$0xff]   ;;  %v2996_v6 = vld [vmem:[%s3724_s0 + $0x20] sm:$0xff]  }
  0x1e   :  { %655 = vst [vmem:[#allocation2 + $0x20] sm:$0xff] %v3148_v0  ;;  %656 = vst [vmem:[#allocation2 + $0x28] sm:$0xff] %v3148_v0  ;;  %v2997_v7 = vld [vmem:[%s3724_s0 + $0x28] sm:$0xff]   ;;  %v2998_v8 = vld [vmem:[%s3724_s0 + $0x30] sm:$0xff]  }
  0x1f   :  { %657 = vst [vmem:[#allocation2 + $0x30] sm:$0xff] %v3148_v0  ;;  %658 = vst [vmem:[#allocation2 + $0x38] sm:$0xff] %v3148_v0  ;;  %v3012_v9 = vld [vmem:[#allocation5 + $0x78] sm:$0xff]   ;;  %v3000_v11 = vld [vmem:[%s3724_s0 + $0x40] sm:$0xff]  }
  0x20   :  { %659 = vst [vmem:[#allocation2 + $0x40] sm:$0xff] %v3148_v0  ;;  %660 = vst [vmem:[#allocation2 + $0x48] sm:$0xff] %v3148_v0  ;;  %2875 = vmatmul.mubr.msk.bf16.vlgmr.msra.gmra.mxu0 %vm229_vm0, %v2993_v3  ;;  %2664 = vmatprep.subr.bf16.mxu1 %v3012_v9  ;;  %v2999_v10 = vld [vmem:[%s3724_s0 + $0x38] sm:$0xff]   ;;  %v3001_v12 = vld [vmem:[%s3724_s0 + $0x48] sm:$0xff]  }
  0x21   :  { %661 = vst [vmem:[#allocation2 + $0x50] sm:$0xff] %v3148_v0  ;;  %662 = vst [vmem:[#allocation2 + $0x58] sm:$0xff] %v3148_v0  ;;  %2878 = vmatprep.mubr.msk.bf16.mxu0 %vm229_vm0, %v2994_v4  ;;  %v3002_v13 = vld [vmem:[%s3724_s0 + $0x50] sm:$0xff]   ;;  %v3003_v14 = vld [vmem:[%s3724_s0 + $0x58] sm:$0xff]  }
  0x22   :  { %663 = vst [vmem:[#allocation2 + $0x60] sm:$0xff] %v3148_v0  ;;  %664 = vst [vmem:[#allocation2 + $0x68] sm:$0xff] %v3148_v0  ;;  %v3004_v15 = vld [vmem:[%s3724_s0 + $0x60] sm:$0xff]   ;;  %v3005_v16 = vld [vmem:[%s3724_s0 + $0x68] sm:$0xff]  }
  0x23   :  { %665 = vst [vmem:[#allocation2 + $0x70] sm:$0xff] %v3148_v0  ;;  %666 = vst [vmem:[#allocation2 + $0x78] sm:$0xff] %v3148_v0  ;;  %v3006_v17 = vld [vmem:[%s3724_s0 + $0x70] sm:$0xff]   ;;  %v3007_v18 = vld [vmem:[%s3724_s0 + $0x78] sm:$0xff]  }
  0x24   :  { %667 = vst [vmem:[#allocation2 + $0x80] sm:$0xff] %v3148_v0  ;;  %668 = vst [vmem:[#allocation2 + $0x88] sm:$0xff] %v3148_v0  ;;  %v3008_v19 = vld [vmem:[%s3724_s0 + $0x80] sm:$0xff]   ;;  %v3009_v20 = vld [vmem:[%s3724_s0 + $0x88] sm:$0xff]  }
  0x25   :  { %669 = vst [vmem:[#allocation2 + $0x90] sm:$0xff] %v3148_v0  ;;  %670 = vst [vmem:[#allocation2 + $0x98] sm:$0xff] %v3148_v0  ;;  %v3010_v21 = vld [vmem:[%s3724_s0 + $0x90] sm:$0xff]   ;;  %v3013_v22 = vld [vmem:[#allocation5 + $0x38] sm:$0xff]  }
  0x26   :  { %671 = vst [vmem:[#allocation2 + $0xa0] sm:$0xff] %v3148_v0  ;;  %672 = vst [vmem:[#allocation2 + $0xa8] sm:$0xff] %v3148_v0  ;;  %2665 = vmatpush3.bf16.msra.mxu1 %v3013_v22  ;;  %v3014_v23 = vld [vmem:[#allocation5 + $0x70] sm:$0xff]   ;;  %v3011_v24 = vld [vmem:[%s3724_s0 + $0x98] sm:$0xff]  }
  0x27   :  { %673 = vst [vmem:[#allocation2 + $0xb0] sm:$0xff] %v3148_v0  ;;  %674 = vst [vmem:[#allocation2 + $0xb8] sm:$0xff] %v3148_v0  ;;  %v3015_v25 = vld [vmem:[#allocation5 + $0x30] sm:$0xff]   ;;  %2666 = vmatprep.subr.bf16.mxu1 %v3014_v23  ;;  %v3016_v26 = vld [vmem:[#allocation5 + $0x68] sm:$0xff]  }
  0x28   :  { %675 = vst [vmem:[#allocation2 + $0xc0] sm:$0xff] %v3148_v0  ;;  %677 = vst [vmem:[#allocation2 + $0xd0] sm:$0xff] %v3148_v0  ;;  %2879 = vmatmul.mubr.msk.bf16.gmra.mxu0 %vm229_vm0, %v2995_v5  ;;  %v3017_v27 = vld [vmem:[#allocation5 + $0x28] sm:$0xff]   ;;  %v3018_v28 = vld [vmem:[#allocation5 + $0x60] sm:$0xff]  }
  0x29   :  { %678 = vst [vmem:[#allocation2 + $0xd8] sm:$0xff] %v3148_v0  ;;  %679 = vst [vmem:[#allocation2 + $0xe0] sm:$0xff] %v3148_v0  ;;  %2882 = vmatprep.mubr.msk.bf16.mxu0 %vm229_vm0, %v2996_v6  ;;  %v3019_v29 = vld [vmem:[#allocation5 + $0x20] sm:$0xff]   ;;  %v3020_v30 = vld [vmem:[#allocation5 + $0x138] sm:$0xff]  }
  0x2a   :  { %680 = vst [vmem:[#allocation2 + $0xe8] sm:$0xff] %v3148_v0  ;;  %681 = vst [vmem:[#allocation2 + $0xf0] sm:$0xff] %v3148_v0  ;;  %2667 = vmatpush3.bf16.msra.mxu1 %v3015_v25  ;;  %v3021_v31 = vld [vmem:[#allocation5 + $0x58] sm:$0xff]   ;;  %2914 = vmatprep.subr.bf16.mxu0 %v3020_v30  ;;  %v3023_v33 = vld [vmem:[#allocation5 + $0x130] sm:$0xff]  }
  0x2b   :  { %682 = vst [vmem:[#allocation2 + $0xf8] sm:$0xff] %v3148_v0  ;;  %683 = vst [vmem:[#allocation2 + $0x100] sm:$0xff] %v3148_v0  ;;  %2668 = vmatprep.subr.bf16.mxu1 %v3016_v26  ;;  %v3022_v32 = vld [vmem:[#allocation5 + $0x18] sm:$0xff]   ;;  %2915 = vmatpush3.bf16.msra.mxu0 %v3020_v30  ;;  %v3024_v34 = vld [vmem:[#allocation5 + $0x50] sm:$0xff]  }
  0x2c   :  { %684 = vst [vmem:[#allocation2 + $0x108] sm:$0xff] %v3148_v0  ;;  %685 = vst [vmem:[#allocation2 + $0x110] sm:$0xff] %v3148_v0  ;;  %2916 = vmatprep.subr.bf16.mxu0 %v3023_v33  ;;  %v3025_v35 = vld [vmem:[#allocation5 + $0x10] sm:$0xff]   ;;  %v3026_v36 = vld [vmem:[#allocation5 + $0x128] sm:$0xff]  }
  0x2d   :  { %686 = vst [vmem:[#allocation2 + $0x118] sm:$0xff] %v3148_v0  ;;  %687 = vst [vmem:[#allocation2 + $0x120] sm:$0xff] %v3148_v0  ;;  %v3027_v37 = vld [vmem:[#allocation5 + $0x48] sm:$0xff]   ;;  %v3029_v39 = vld [vmem:[#allocation5 + $0x120] sm:$0xff]  }
  0x2e   :  { %688 = vst [vmem:[#allocation2 + $0x128] sm:$0xff] %v3148_v0  ;;  %689 = vst [vmem:[#allocation2 + $0x130] sm:$0xff] %v3148_v0  ;;  %2669 = vmatpush3.bf16.msra.mxu1 %v3017_v27  ;;  %v3028_v38 = vld [vmem:[#allocation5 + $0x8] sm:$0xff]   ;;  %v3030_v40 = vld [vmem:[#allocation5 + $0x40] sm:$0xff]  }
  0x2f   :  { %690 = vst [vmem:[#allocation2 + $0x138] sm:$0xff] %v3148_v0  ;;  %691 = vst [vmem:[#allocation2 + $0x140] sm:$0xff] %v3148_v0  ;;  %2670 = vmatprep.subr.bf16.mxu1 %v3018_v28  ;;  %2917 = vmatpush3.bf16.msra.mxu0 %v3023_v33  ;;  %v3031_v41 = vld [vmem:[#allocation5] sm:$0xff]   ;;  %v3032_v42 = vld [vmem:[#allocation5 + $0x118] sm:$0xff]  }
  0x30   :  { %692 = vst [vmem:[#allocation2 + $0x148] sm:$0xff] %v3148_v0  ;;  %693 = vst [vmem:[#allocation2 + $0x150] sm:$0xff] %v3148_v0  ;;  %2883 = vmatmul.mubr.msk.bf16.gmra.mxu0 %vm229_vm0, %v2997_v7  ;;  %2918 = vmatprep.subr.bf16.mxu0 %v3026_v36  ;;  %v3033_v43 = vld [vmem:[#allocation5 + $0x110] sm:$0xff]   ;;  %v3034_v44 = vld [vmem:[#allocation5 + $0x108] sm:$0xff]  }
  0x31   :  { %694 = vst [vmem:[#allocation2 + $0x158] sm:$0xff] %v3148_v0  ;;  %695 = vst [vmem:[#allocation2 + $0x160] sm:$0xff] %v3148_v0  ;;  %2886 = vmatprep.mubr.msk.bf16.mxu0 %vm229_vm0, %v2998_v8  ;;  %v3035_v45 = vld [vmem:[#allocation5 + $0x100] sm:$0xff]   ;;  %v3036_v46 = vld [vmem:[#allocation5 + $0xf8] sm:$0xff]  }
  0x32   :  { %696 = vst [vmem:[#allocation2 + $0x168] sm:$0xff] %v3148_v0  ;;  %697 = vst [vmem:[#allocation2 + $0x170] sm:$0xff] %v3148_v0  ;;  %2671 = vmatpush3.bf16.msra.mxu1 %v3019_v29  ;;  %v3393_v47 = vld [vmem:[%s3726_s2] ss:$0 sm:$0xff] }
  0x33   :  { %698 = vst [vmem:[#allocation2 + $0x178] sm:$0xff] %v3148_v0  ;;  %699 = vst [vmem:[#allocation2 + $0x180] sm:$0xff] %v3148_v0  ;;  %2672 = vmatprep.subr.bf16.mxu1 %v3021_v31  ;;  %2919 = vmatpush3.bf16.msra.mxu0 %v3026_v36  ;;  %v3398_v49 = vld [vmem:[%s3727_s3] ss:$0 sm:$0xff] }
  0x34   :  { %700 = vst [vmem:[#allocation2 + $0x188] sm:$0xff] %v3148_v0  ;;  %701 = vst [vmem:[#allocation2 + $0x190] sm:$0xff] %v3148_v0  ;;  %2920 = vmatprep.subr.bf16.mxu0 %v3029_v39 }
  0x35   :  { %1551 = vst [vmem:[#allocation3] sm:$0xff] %v3148_v0  ;;  %1552 = vst [vmem:[#allocation3 + $0x8] sm:$0xff] %v3148_v0 }
  0x36   :  { %1553 = vst [vmem:[#allocation3 + $0x10] sm:$0xff] %v3148_v0  ;;  %1554 = vst [vmem:[#allocation3 + $0x18] sm:$0xff] %v3148_v0  ;;  %2673 = vmatpush3.bf16.msra.mxu1 %v3022_v32 }
  0x37   :  { %1555 = vst [vmem:[#allocation3 + $0x20] sm:$0xff] %v3148_v0  ;;  %1556 = vst [vmem:[#allocation3 + $0x28] sm:$0xff] %v3148_v0  ;;  %2674 = vmatprep.subr.bf16.mxu1 %v3024_v34  ;;  %2921 = vmatpush3.bf16.msra.mxu0 %v3029_v39 }
  0x38   :  { %1557 = vst [vmem:[#allocation3 + $0x30] sm:$0xff] %v3148_v0  ;;  %1558 = vst [vmem:[#allocation3 + $0x38] sm:$0xff] %v3148_v0  ;;  %2887 = vmatmul.mubr.msk.bf16.gmra.mxu0 %vm229_vm0, %v2999_v10  ;;  %2922 = vmatprep.subr.bf16.mxu0 %v3032_v42 }
  0x39   :  { %1559 = vst [vmem:[#allocation3 + $0x40] sm:$0xff] %v3148_v0  ;;  %1561 = vst [vmem:[#allocation3 + $0x50] sm:$0xff] %v3148_v0  ;;  %2890 = vmatprep.mubr.msk.bf16.mxu0 %vm229_vm0, %v3000_v11 }
  0x3a   :  { %1562 = vst [vmem:[#allocation3 + $0x58] sm:$0xff] %v3148_v0  ;;  %1563 = vst [vmem:[#allocation3 + $0x60] sm:$0xff] %v3148_v0  ;;  %2675 = vmatpush3.bf16.msra.mxu1 %v3025_v35 }
  0x3b   :  { %1564 = vst [vmem:[#allocation3 + $0x68] sm:$0xff] %v3148_v0  ;;  %1565 = vst [vmem:[#allocation3 + $0x70] sm:$0xff] %v3148_v0  ;;  %2676 = vmatprep.subr.bf16.mxu1 %v3027_v37  ;;  %2923 = vmatpush3.bf16.msra.mxu0 %v3032_v42 }
  0x3c   :  { %1566 = vst [vmem:[#allocation3 + $0x78] sm:$0xff] %v3148_v0  ;;  %1567 = vst [vmem:[#allocation3 + $0x80] sm:$0xff] %v3148_v0  ;;  %2924 = vmatprep.subr.bf16.mxu0 %v3033_v43 }
  0x3d   :  { %1568 = vst [vmem:[#allocation3 + $0x88] sm:$0xff] %v3148_v0  ;;  %1569 = vst [vmem:[#allocation3 + $0x90] sm:$0xff] %v3148_v0 }
  0x3e   :  { %2018 = vst [vmem:[#allocation4] sm:$0xff] %v3148_v0  ;;  %2019 = vst [vmem:[#allocation4 + $0x8] sm:$0xff] %v3148_v0  ;;  %2677 = vmatpush3.bf16.msra.mxu1 %v3028_v38 }
  0x3f   :  { %2020 = vst [vmem:[#allocation4 + $0x10] sm:$0xff] %v3148_v0  ;;  %2021 = vst [vmem:[#allocation4 + $0x18] sm:$0xff] %v3148_v0  ;;  %2678 = vmatprep.subr.bf16.mxu1 %v3030_v40  ;;  %2925 = vmatpush3.bf16.msra.mxu0 %v3033_v43 }
  0x40   :  { %2022 = vst [vmem:[#allocation4 + $0x20] sm:$0xff] %v3148_v0  ;;  %2024 = vst [vmem:[#allocation4 + $0x30] sm:$0xff] %v3148_v0  ;;  %2891 = vmatmul.mubr.msk.bf16.gmra.mxu0 %vm229_vm0, %v3001_v12  ;;  %2926 = vmatprep.subr.bf16.mxu0 %v3034_v44 }
  0x41   :  { %2025 = vst [vmem:[#allocation4 + $0x38] sm:$0xff] %v3148_v0  ;;  %2026 = vst [vmem:[#allocation4 + $0x40] sm:$0xff] %v3148_v0  ;;  %2894 = vmatprep.mubr.msk.bf16.mxu0 %vm229_vm0, %v3002_v13 }
  0x42   :  { %2027 = vst [vmem:[#allocation4 + $0x48] sm:$0xff] %v3148_v0  ;;  %2028 = vst [vmem:[#allocation4 + $0x50] sm:$0xff] %v3148_v0  ;;  %2679 = vmatpush3.bf16.msra.mxu1 %v3031_v41 }
  0x43   :  { %1582 = vst [vmem:[#allocation3 + $0x29] sm:$0xff] %v3148_v0  ;;  %1594 = vst [vmem:[#allocation3 + $0x79] sm:$0xff] %v3148_v0  ;;  %2927 = vmatpush3.bf16.msra.mxu0 %v3034_v44  ;;  %2716 = vmatprep.subr.bf16.mxu1 %v3036_v46 }
  0x44   :  { %2037 = vst [vmem:[#allocation4 + $0x19] sm:$0xff] %v3148_v0  ;;  %2045 = vst [vmem:[#allocation4 + $0x49] sm:$0xff] %v3148_v0  ;;  %2928 = vmatprep.subr.bf16.mxu0 %v3035_v45 }
  0x47   :  { %2929 = vmatpush3.bf16.msra.mxu0 %v3035_v45 }
  0x48   :  { %2895 = vmatmul.mubr.msk.bf16.gmra.mxu0 %vm229_vm0, %v3003_v14 }
  0x49   :  { %2898 = vmatprep.mubr.msk.bf16.mxu0 %vm229_vm0, %v3004_v15 }
  0x50   :  { %2899 = vmatmul.mubr.msk.bf16.gmra.mxu0 %vm229_vm0, %v3005_v16 }
  0x51   :  { %2902 = vmatprep.mubr.msk.bf16.mxu0 %vm229_vm0, %v3006_v17 }
  0x58   :  { %2903 = vmatmul.mubr.msk.bf16.gmra.mxu0 %vm229_vm0, %v3007_v18 }
  0x59   :  { %2906 = vmatprep.mubr.msk.bf16.mxu0 %vm229_vm0, %v3008_v19 }
  0x60   :  { %2907 = vmatmul.mubr.msk.bf16.gmra.mxu0 %vm229_vm0, %v3009_v20 }
  0x61   :  { %2910 = vmatprep.mubr.msk.bf16.mxu0 %vm229_vm0, %v3010_v21 }
  0x68   :  { %2911 = vmatmul.mubr.msk.bf16.gmra.mxu0 %vm229_vm0, %v3011_v24 }
  0xe0   :  { %v2876_v48 = vpop.f32.mrf.mxu0 }
  0xe1   :  { %v333_v50 = vadd.f32 %v2876_v48, %v3393_v47 }
  0xe2   :  { %v324_v51 = vpop.f32.mrf.mxu0 }
  0xe3   :  { %vm485_vm1 = vcmp.ge.f32.partialorder %v333_v50, 0.0  ;;  %v532_v52 = vmul.f32 %v3398_v49, %v333_v50  ;;  %v325_v53 = vadd.f32 %v3393_v47, %v324_v51 }
  0xe4   :  { %v2877_v54 = vpop.f32.mrf.mxu0 }
  0xe5   :  { %v572_v55 = vsel %vm485_vm1, %v333_v50, %v532_v52  ;;  %vm483_vm2 = vcmp.ge.f32.partialorder %v325_v53, 0.0  ;;  %v530_v56 = vmul.f32 %v3398_v49, %v325_v53  ;;  %v336_v57 = vadd.f32 %v2877_v54, %v3393_v47  ;;  %v3037_v52 = vld [vmem:[#allocation5 + $0xb8] sm:$0xff]  }
  0xe6   :  { %725 = vst [vmem:[#allocation2 + $0x12] sm:$0xff] %v572_v55  ;;  %v327_v58 = vpop.f32.mrf.mxu0  ;;  %v3038_v55 = vld [vmem:[#allocation5 + $0xf0] sm:$0xff]  }
  0xe7   :  { %v570_v59 = vsel %vm483_vm2, %v325_v53, %v530_v56  ;;  %vm486_vm3 = vcmp.ge.f32.partialorder %v336_v57, 0.0  ;;  %v533_v60 = vmul.f32 %v3398_v49, %v336_v57  ;;  %v328_v61 = vadd.f32 %v3393_v47, %v327_v58 }
  0xe8   :  { %723 = vst [vmem:[#allocation2 + $0x2] sm:$0xff] %v570_v59  ;;  %v2880_v62 = vpop.f32.mrf.mxu0 }
  0xe9   :  { %v573_v63 = vsel %vm486_vm3, %v336_v57, %v533_v60  ;;  %vm484_vm4 = vcmp.ge.f32.partialorder %v328_v61, 0.0  ;;  %v531_v0 = vmul.f32 %v3398_v49, %v328_v61  ;;  %v349_v1 = vadd.f32 %v2880_v62, %v3393_v47 }
  0xea   :  { %726 = vst [vmem:[#allocation2 + $0x1a] sm:$0xff] %v573_v63  ;;  %v340_v2 = vpop.f32.mrf.mxu0  ;;  %v3039_v63 = vld [vmem:[#allocation5 + $0xb0] sm:$0xff]  }
  0xeb   :  { %v571_v3 = vsel %vm484_vm4, %v328_v61, %v531_v0  ;;  %vm489_vm5 = vcmp.ge.f32.partialorder %v349_v1, 0.0  ;;  %v536_v4 = vmul.f32 %v3398_v49, %v349_v1  ;;  %v341_v5 = vadd.f32 %v3393_v47, %v340_v2 }
  0xec   :  { %724 = vst [vmem:[#allocation2 + $0xa] sm:$0xff] %v571_v3  ;;  %v2881_v6 = vpop.f32.mrf.mxu0 }
  0xed   :  { %v576_v7 = vsel %vm489_vm5, %v349_v1, %v536_v4  ;;  %vm487_vm6 = vcmp.ge.f32.partialorder %v341_v5, 0.0  ;;  %v534_v8 = vmul.f32 %v3398_v49, %v341_v5  ;;  %v352_v9 = vadd.f32 %v2881_v6, %v3393_v47  ;;  %v3040_v1 = vld [vmem:[#allocation5 + $0xe8] sm:$0xff]  }
  0xee   :  { %729 = vst [vmem:[#allocation2 + $0x32] sm:$0xff] %v576_v7  ;;  %v343_v10 = vpop.f32.mrf.mxu0 }
  0xef   :  { %v574_v11 = vsel %vm487_vm6, %v341_v5, %v534_v8  ;;  %vm490_vm7 = vcmp.ge.f32.partialorder %v352_v9, 0.0  ;;  %v537_v12 = vmul.f32 %v3398_v49, %v352_v9  ;;  %v344_v13 = vadd.f32 %v3393_v47, %v343_v10 }
  0xf0   :  { %727 = vst [vmem:[#allocation2 + $0x22] sm:$0xff] %v574_v11  ;;  %v2884_v14 = vpop.f32.mrf.mxu0  ;;  %v3042_v11 = vld [vmem:[#allocation5 + $0xe0] sm:$0xff]  }
  0xf1   :  { %v577_v15 = vsel %vm490_vm7, %v352_v9, %v537_v12  ;;  %vm488_vm8 = vcmp.ge.f32.partialorder %v344_v13, 0.0  ;;  %v535_v16 = vmul.f32 %v3398_v49, %v344_v13  ;;  %v365_v17 = vadd.f32 %v2884_v14, %v3393_v47  ;;  %v3041_v9 = vld [vmem:[#allocation5 + $0xa8] sm:$0xff]  }
  0xf2   :  { %730 = vst [vmem:[#allocation2 + $0x3a] sm:$0xff] %v577_v15  ;;  %v356_v18 = vpop.f32.mrf.mxu0 }
  0xf3   :  { %v575_v19 = vsel %vm488_vm8, %v344_v13, %v535_v16  ;;  %vm493_vm9 = vcmp.ge.f32.partialorder %v365_v17, 0.0  ;;  %v540_v20 = vmul.f32 %v3398_v49, %v365_v17  ;;  %v357_v21 = vadd.f32 %v3393_v47, %v356_v18  ;;  %v795_v35 = vld [vmem:[#allocation2 + $0x1] ss:$4 sm:$0xff]  ;;  %v831_v36 = vld [vmem:[#allocation2 + $0x4] ss:$4 sm:$0xff] }
  0xf4   :  { %728 = vst [vmem:[#allocation2 + $0x2a] sm:$0xff] %v575_v19  ;;  %v2885_v22 = vpop.f32.mrf.mxu0  ;;  %v783_v51 = vld [vmem:[#allocation2] ss:$4 sm:$0xff] }
  0xf5   :  { %v580_v23 = vsel %vm493_vm9, %v365_v17, %v540_v20  ;;  %vm491_vm10 = vcmp.ge.f32.partialorder %v357_v21, 0.0  ;;  %v538_v24 = vmul.f32 %v3398_v49, %v357_v21  ;;  %v368_v25 = vadd.f32 %v2885_v22, %v3393_v47  ;;  %v3043_v19 = vld [vmem:[#allocation5 + $0xa0] sm:$0xff]  }
  0xf6   :  { %733 = vst [vmem:[#allocation2 + $0x52] sm:$0xff] %v580_v23  ;;  %v359_v26 = vpop.f32.mrf.mxu0 }
  0xf7   :  { %v578_v27 = vsel %vm491_vm10, %v357_v21, %v538_v24  ;;  %vm494_vm11 = vcmp.ge.f32.partialorder %v368_v25, 0.0  ;;  %v541_v28 = vmul.f32 %v3398_v49, %v368_v25  ;;  %v360_v29 = vadd.f32 %v3393_v47, %v359_v26 }
  0xf8   :  { %731 = vst [vmem:[#allocation2 + $0x42] sm:$0xff] %v578_v27  ;;  %v2888_v30 = vpop.f32.mrf.mxu0 }
  0xf9   :  { %v581_v31 = vsel %vm494_vm11, %v368_v25, %v541_v28  ;;  %vm492_vm12 = vcmp.ge.f32.partialorder %v360_v29, 0.0  ;;  %v539_v32 = vmul.f32 %v3398_v49, %v360_v29  ;;  %v381_v33 = vadd.f32 %v2888_v30, %v3393_v47  ;;  %v3044_v28 = vld [vmem:[#allocation5 + $0xd8] sm:$0xff]  }
  0xfa   :  { %734 = vst [vmem:[#allocation2 + $0x5a] sm:$0xff] %v581_v31  ;;  %v372_v34 = vpop.f32.mrf.mxu0 }
  0xfb   :  { %v579_v37 = vsel %vm492_vm12, %v360_v29, %v539_v32  ;;  %vm497_vm13 = vcmp.ge.f32.partialorder %v381_v33, 0.0  ;;  %v544_v38 = vmul.f32 %v3398_v49, %v381_v33  ;;  %v373_v39 = vadd.f32 %v3393_v47, %v372_v34  ;;  %v797_v40 = vld [vmem:[#allocation2 + $0x21] ss:$4 sm:$0xff]  ;;  %v833_v41 = vld [vmem:[#allocation2 + $0x24] ss:$4 sm:$0xff] }
  0xfc   :  { %732 = vst [vmem:[#allocation2 + $0x4a] sm:$0xff] %v579_v37  ;;  %v2889_v42 = vpop.f32.mrf.mxu0  ;;  %v843_v43 = vpack.c.bf16 %v797_v40, %v795_v35  ;;  %v846_v44 = vpack.c.bf16 %v833_v41, %v831_v36  ;;  %v785_v45 = vld [vmem:[#allocation2 + $0x20] ss:$4 sm:$0xff] }
  0xfd   :  { %v584_v46 = vsel %vm497_vm13, %v381_v33, %v544_v38  ;;  %vm495_vm14 = vcmp.ge.f32.partialorder %v373_v39, 0.0  ;;  %v542_v48 = vmul.f32 %v3398_v49, %v373_v39  ;;  %v384_v50 = vadd.f32 %v2889_v42, %v3393_v47  ;;  %v3045_v37 = vld [vmem:[#allocation5 + $0x98] sm:$0xff]   ;;  %v3046_v40 = vld [vmem:[#allocation5 + $0xd0] sm:$0xff]  }
  0xfe   :  { %737 = vst [vmem:[#allocation2 + $0x72] sm:$0xff] %v584_v46  ;;  %v375_v53 = vpop.f32.mrf.mxu0  ;;  %1291 = vmatprep.mubr.bf16.mxu1 %v843_v43  ;;  %2930 = vmatprep.mubr.bf16.mxu0 %v846_v44  ;;  %v842_v54 = vpack.c.bf16 %v785_v45, %v783_v51  ;;  %v3047_v51 = vld [vmem:[#allocation5 + $0x90] sm:$0xff]  }
  0xff   :  { %v582_v56 = vsel %vm495_vm14, %v373_v39, %v542_v48  ;;  %vm498_vm15 = vcmp.ge.f32.partialorder %v384_v50, 0.0  ;;  %v545_v57 = vmul.f32 %v3398_v49, %v384_v50  ;;  %v376_v58 = vadd.f32 %v3393_v47, %v375_v53 }
 0x100   :  { %735 = vst [vmem:[#allocation2 + $0x62] sm:$0xff] %v582_v56  ;;  %1292 = vmatmul.mubr.bf16.vlgmr.msra.gmra.mxu1 %v842_v54  ;;  %v2892_v59 = vpop.f32.mrf.mxu0 }
 0x101   :  { %v585_v60 = vsel %vm498_vm15, %v384_v50, %v545_v57  ;;  %vm496_vm1 = vcmp.ge.f32.partialorder %v376_v58, 0.0  ;;  %v543_v61 = vmul.f32 %v3398_v49, %v376_v58  ;;  %v397_v62 = vadd.f32 %v2892_v59, %v3393_v47  ;;  %2717 = vmatpush3.bf16.msra.mxu1 %v3037_v52  ;;  %v841_v50 = vld [vmem:[#allocation2 + $0xa4] ss:$4 sm:$0xff] }
 0x102   :  { %738 = vst [vmem:[#allocation2 + $0x7a] sm:$0xff] %v585_v60  ;;  %v388_v0 = vpop.f32.mrf.mxu0  ;;  %2718 = vmatprep.subr.bf16.mxu1 %v3038_v55  ;;  %v3048_v59 = vld [vmem:[#allocation5 + $0xc8] sm:$0xff]  }
 0x103   :  { %v583_v2 = vsel %vm496_vm1, %v376_v58, %v543_v61  ;;  %vm501_vm2 = vcmp.ge.f32.partialorder %v397_v62, 0.0  ;;  %v548_v3 = vmul.f32 %v3398_v49, %v397_v62  ;;  %v389_v4 = vadd.f32 %v3393_v47, %v388_v0  ;;  %v799_v21 = vld [vmem:[#allocation2 + $0x41] ss:$4 sm:$0xff]  ;;  %v835_v22 = vld [vmem:[#allocation2 + $0x44] ss:$4 sm:$0xff] }
 0x104   :  { %736 = vst [vmem:[#allocation2 + $0x6a] sm:$0xff] %v583_v2  ;;  %v2893_v5 = vpop.f32.mrf.mxu0  ;;  %v787_v36 = vld [vmem:[#allocation2 + $0x40] ss:$4 sm:$0xff] }
 0x105   :  { %v588_v6 = vsel %vm501_vm2, %v397_v62, %v548_v3  ;;  %vm499_vm3 = vcmp.ge.f32.partialorder %v389_v4, 0.0  ;;  %v546_v7 = vmul.f32 %v3398_v49, %v389_v4  ;;  %v400_v8 = vadd.f32 %v2893_v5, %v3393_v47  ;;  %2719 = vmatpush3.bf16.msra.mxu1 %v3039_v63 }
 0x106   :  { %741 = vst [vmem:[#allocation2 + $0x92] sm:$0xff] %v588_v6  ;;  %v391_v10 = vpop.f32.mrf.mxu0  ;;  %2720 = vmatprep.subr.bf16.mxu1 %v3040_v1 }
 0x107   :  { %v586_v12 = vsel %vm499_vm3, %v389_v4, %v546_v7  ;;  %vm502_vm4 = vcmp.ge.f32.partialorder %v400_v8, 0.0  ;;  %v549_v13 = vmul.f32 %v3398_v49, %v400_v8  ;;  %v392_v14 = vadd.f32 %v3393_v47, %v391_v10  ;;  %v3049_v4 = vld [vmem:[#allocation5 + $0x88] sm:$0xff]   ;;  %v3050_v7 = vld [vmem:[#allocation5 + $0xc0] sm:$0xff]  }
 0x108   :  { %739 = vst [vmem:[#allocation2 + $0x82] sm:$0xff] %v586_v12  ;;  %v2896_v15 = vpop.f32.mrf.mxu0 }
 0x109   :  { %v589_v16 = vsel %vm502_vm4, %v400_v8, %v549_v13  ;;  %vm500_vm5 = vcmp.ge.f32.partialorder %v392_v14, 0.0  ;;  %v547_v17 = vmul.f32 %v3398_v49, %v392_v14  ;;  %v413_v18 = vadd.f32 %v2896_v15, %v3393_v47  ;;  %2721 = vmatpush3.bf16.msra.mxu1 %v3041_v9  ;;  %v3051_v15 = vld [vmem:[#allocation5 + $0x80] sm:$0xff]  }
 0x10a   :  { %742 = vst [vmem:[#allocation2 + $0x9a] sm:$0xff] %v589_v16  ;;  %v404_v20 = vpop.f32.mrf.mxu0  ;;  %2722 = vmatprep.subr.bf16.mxu1 %v3042_v11 }
 0x10b   :  { %v587_v23 = vsel %vm500_vm5, %v392_v14, %v547_v17  ;;  %vm505_vm6 = vcmp.ge.f32.partialorder %v413_v18, 0.0  ;;  %v552_v24 = vmul.f32 %v3398_v49, %v413_v18  ;;  %v405_v25 = vadd.f32 %v3393_v47, %v404_v20  ;;  %v801_v26 = vld [vmem:[#allocation2 + $0x61] ss:$4 sm:$0xff]  ;;  %v837_v27 = vld [vmem:[#allocation2 + $0x64] ss:$4 sm:$0xff] }
 0x10c   :  { %740 = vst [vmem:[#allocation2 + $0x8a] sm:$0xff] %v587_v23  ;;  %v2897_v29 = vpop.f32.mrf.mxu0  ;;  %v848_v30 = vpack.c.bf16 %v801_v26, %v799_v21  ;;  %v851_v31 = vpack.c.bf16 %v837_v27, %v835_v22  ;;  %v789_v32 = vld [vmem:[#allocation2 + $0x60] ss:$4 sm:$0xff] }
 0x10d   :  { %v592_v33 = vsel %vm505_vm6, %v413_v18, %v552_v24  ;;  %vm503_vm7 = vcmp.ge.f32.partialorder %v405_v25, 0.0  ;;  %v550_v34 = vmul.f32 %v3398_v49, %v405_v25  ;;  %v416_v35 = vadd.f32 %v2897_v29, %v3393_v47  ;;  %2723 = vmatpush3.bf16.msra.mxu1 %v3043_v19 }
 0x10e   :  { %765 = vst [vmem:[#allocation2 + $0xe2] sm:$0xff] %v592_v33  ;;  %v407_v38 = vpop.f32.mrf.mxu0  ;;  %1299 = vmatprep.mubr.bf16.mxu1 %v848_v30  ;;  %2931 = vmatmul.mubr.bf16.vlgmr.msra.gmra.mxu0 %v851_v31  ;;  %v847_v39 = vpack.c.bf16 %v789_v32, %v787_v36 }
 0x10f   :  { %v590_v41 = vsel %vm503_vm7, %v405_v25, %v550_v34  ;;  %vm506_vm8 = vcmp.ge.f32.partialorder %v416_v35, 0.0  ;;  %v553_v42 = vmul.f32 %v3398_v49, %v416_v35  ;;  %v408_v43 = vadd.f32 %v3393_v47, %v407_v38  ;;  %2724 = vmatprep.subr.bf16.mxu1 %v3044_v28 }
 0x110   :  { %763 = vst [vmem:[#allocation2 + $0xd2] sm:$0xff] %v590_v41  ;;  %1300 = vmatmul.mubr.bf16.gmra.mxu1 %v847_v39  ;;  %v2900_v44 = vpop.f32.mrf.mxu0 }
 0x111   :  { %v593_v45 = vsel %vm506_vm8, %v416_v35, %v553_v42  ;;  %vm504_vm9 = vcmp.ge.f32.partialorder %v408_v43, 0.0  ;;  %v551_v46 = vmul.f32 %v3398_v49, %v408_v43  ;;  %v429_v48 = vadd.f32 %v2900_v44, %v3393_v47  ;;  %2725 = vmatpush3.bf16.msra.mxu1 %v3045_v37  ;;  %v805_v53 = vld [vmem:[#allocation2 + $0xa1] ss:$4 sm:$0xff]  ;;  %v793_v3 = vld [vmem:[#allocation2 + $0xa0] ss:$4 sm:$0xff] }
 0x112   :  { %766 = vst [vmem:[#allocation2 + $0xea] sm:$0xff] %v593_v45  ;;  %v420_v52 = vpop.f32.mrf.mxu0  ;;  %2726 = vmatprep.subr.bf16.mxu1 %v3046_v40 }
 0x113   :  { %v591_v54 = vsel %vm504_vm9, %v408_v43, %v551_v46  ;;  %vm509_vm10 = vcmp.ge.f32.partialorder %v429_v48, 0.0  ;;  %v556_v55 = vmul.f32 %v3398_v49, %v429_v48  ;;  %v421_v56 = vadd.f32 %v3393_v47, %v420_v52  ;;  %v803_v57 = vld [vmem:[#allocation2 + $0x81] ss:$4 sm:$0xff]  ;;  %v839_v58 = vld [vmem:[#allocation2 + $0x84] ss:$4 sm:$0xff] }
 0x114   :  { %764 = vst [vmem:[#allocation2 + $0xda] sm:$0xff] %v591_v54  ;;  %v2901_v60 = vpop.f32.mrf.mxu0  ;;  %v853_v61 = vpack.c.bf16 %v805_v53, %v803_v57  ;;  %v856_v62 = vpack.c.bf16 %v841_v50, %v839_v58  ;;  %v791_v63 = vld [vmem:[#allocation2 + $0x80] ss:$4 sm:$0xff] }
 0x115   :  { %v596_v0 = vsel %vm509_vm10, %v429_v48, %v556_v55  ;;  %vm507_vm11 = vcmp.ge.f32.partialorder %v421_v56, 0.0  ;;  %v554_v1 = vmul.f32 %v3398_v49, %v421_v56  ;;  %v432_v2 = vadd.f32 %v2901_v60, %v3393_v47  ;;  %2727 = vmatpush3.bf16.msra.mxu1 %v3047_v51 }
 0x116   :  { %769 = vst [vmem:[#allocation2 + $0x102] sm:$0xff] %v596_v0  ;;  %v423_v5 = vpop.f32.mrf.mxu0  ;;  %1307 = vmatprep.mubr.bf16.mxu1 %v853_v61  ;;  %2934 = vmatprep.mubr.bf16.mxu0 %v856_v62  ;;  %v852_v6 = vpack.c.bf16 %v793_v3, %v791_v63 }
 0x117   :  { %v594_v8 = vsel %vm507_vm11, %v421_v56, %v554_v1  ;;  %vm510_vm12 = vcmp.ge.f32.partialorder %v432_v2, 0.0  ;;  %v557_v9 = vmul.f32 %v3398_v49, %v432_v2  ;;  %v424_v10 = vadd.f32 %v3393_v47, %v423_v5  ;;  %2728 = vmatprep.subr.bf16.mxu1 %v3048_v59 }
 0x118   :  { %767 = vst [vmem:[#allocation2 + $0xf2] sm:$0xff] %v594_v8  ;;  %1308 = vmatmul.mubr.bf16.gmra.mxu1 %v852_v6  ;;  %v2904_v11 = vpop.f32.mrf.mxu0 }
 0x119   :  { %v597_v12 = vsel %vm510_vm12, %v432_v2, %v557_v9  ;;  %vm508_vm13 = vcmp.ge.f32.partialorder %v424_v10, 0.0  ;;  %v555_v13 = vmul.f32 %v3398_v49, %v424_v10  ;;  %v445_v14 = vadd.f32 %v2904_v11, %v3393_v47  ;;  %2729 = vmatpush3.bf16.msra.mxu1 %v3049_v4 }
 0x11a   :  { %770 = vst [vmem:[#allocation2 + $0x10a] sm:$0xff] %v597_v12  ;;  %v436_v16 = vpop.f32.mrf.mxu0  ;;  %2730 = vmatprep.subr.bf16.mxu1 %v3050_v7 }
 0x11b   :  { %v595_v17 = vsel %vm508_vm13, %v424_v10, %v555_v13  ;;  %vm513_vm14 = vcmp.ge.f32.partialorder %v445_v14, 0.0  ;;  %v560_v18 = vmul.f32 %v3398_v49, %v445_v14  ;;  %v437_v19 = vadd.f32 %v3393_v47, %v436_v16  ;;  %v870_v33 = vld [vmem:[#allocation2 + $0xd1] ss:$4 sm:$0xff]  ;;  %v906_v34 = vld [vmem:[#allocation2 + $0xd4] ss:$4 sm:$0xff] }
 0x11c   :  { %768 = vst [vmem:[#allocation2 + $0xfa] sm:$0xff] %v595_v17  ;;  %v2905_v20 = vpop.f32.mrf.mxu0  ;;  %v858_v48 = vld [vmem:[#allocation2 + $0xd0] ss:$4 sm:$0xff] }
 0x11d   :  { %v600_v21 = vsel %vm513_vm14, %v445_v14, %v560_v18  ;;  %vm511_vm15 = vcmp.ge.f32.partialorder %v437_v19, 0.0  ;;  %v558_v22 = vmul.f32 %v3398_v49, %v437_v19  ;;  %v448_v23 = vadd.f32 %v2905_v20, %v3393_v47  ;;  %2731 = vmatpush3.bf16.msra.mxu1 %v3051_v15 }
 0x11e   :  { %773 = vst [vmem:[#allocation2 + $0x122] sm:$0xff] %v600_v21  ;;  %v439_v24 = vpop.f32.mrf.mxu0  ;;  %v821_v21 = vld [vmem:[#allocation2 + $0x23] ss:$4 sm:$0xff] }
 0x11f   :  { %v598_v25 = vsel %vm511_vm15, %v437_v19, %v558_v22  ;;  %vm514_vm1 = vcmp.ge.f32.partialorder %v448_v23, 0.0  ;;  %v561_v26 = vmul.f32 %v3398_v49, %v448_v23  ;;  %v440_v27 = vadd.f32 %v3393_v47, %v439_v24 }
 0x120   :  { %771 = vst [vmem:[#allocation2 + $0x112] sm:$0xff] %v598_v25  ;;  %v2908_v28 = vpop.f32.mrf.mxu0 }
 0x121   :  { %v601_v29 = vsel %vm514_vm1, %v448_v23, %v561_v26  ;;  %vm512_vm2 = vcmp.ge.f32.partialorder %v440_v27, 0.0  ;;  %v559_v30 = vmul.f32 %v3398_v49, %v440_v27  ;;  %v461_v31 = vadd.f32 %v2908_v28, %v3393_v47 }
 0x122   :  { %774 = vst [vmem:[#allocation2 + $0x12a] sm:$0xff] %v601_v29  ;;  %v452_v32 = vpop.f32.mrf.mxu0  ;;  %v809_v29 = vld [vmem:[#allocation2 + $0x22] ss:$4 sm:$0xff] }
 0x123   :  { %v599_v35 = vsel %vm512_vm2, %v440_v27, %v559_v30  ;;  %vm517_vm3 = vcmp.ge.f32.partialorder %v461_v31, 0.0  ;;  %v564_v36 = vmul.f32 %v3398_v49, %v461_v31  ;;  %v453_v37 = vadd.f32 %v3393_v47, %v452_v32  ;;  %v872_v38 = vld [vmem:[#allocation2 + $0xf1] ss:$4 sm:$0xff]  ;;  %v908_v39 = vld [vmem:[#allocation2 + $0xf4] ss:$4 sm:$0xff] }
 0x124   :  { %772 = vst [vmem:[#allocation2 + $0x11a] sm:$0xff] %v599_v35  ;;  %v2909_v40 = vpop.f32.mrf.mxu0  ;;  %v918_v41 = vpack.c.bf16 %v872_v38, %v870_v33  ;;  %v921_v42 = vpack.c.bf16 %v908_v39, %v906_v34  ;;  %v860_v43 = vld [vmem:[#allocation2 + $0xf0] ss:$4 sm:$0xff]  ;;  %v819_v27 = vld [vmem:[#allocation2 + $0x3] ss:$4 sm:$0xff] }
 0x125   :  { %v604_v44 = vsel %vm517_vm3, %v461_v31, %v564_v36  ;;  %vm515_vm4 = vcmp.ge.f32.partialorder %v453_v37, 0.0  ;;  %v562_v45 = vmul.f32 %v3398_v49, %v453_v37  ;;  %v464_v46 = vadd.f32 %v2909_v40, %v3393_v47  ;;  %v825_v30 = vld [vmem:[#allocation2 + $0x63] ss:$4 sm:$0xff]  ;;  %v807_v31 = vld [vmem:[#allocation2 + $0x2] ss:$4 sm:$0xff] }
 0x126   :  { %777 = vst [vmem:[#allocation2 + $0x142] sm:$0xff] %v604_v44  ;;  %v455_v50 = vpop.f32.mrf.mxu0  ;;  %1315 = vmatprep.mubr.bf16.mxu1 %v918_v41  ;;  %2935 = vmatmul.mubr.bf16.gmra.mxu0 %v921_v42  ;;  %v917_v51 = vpack.c.bf16 %v860_v43, %v858_v48  ;;  %v845_v28 = vpack.c.bf16 %v821_v21, %v819_v27  ;;  %v823_v33 = vld [vmem:[#allocation2 + $0x43] ss:$4 sm:$0xff]  ;;  %v813_v35 = vld [vmem:[#allocation2 + $0x62] ss:$4 sm:$0xff] }
 0x127   :  { %v602_v52 = vsel %vm515_vm4, %v453_v37, %v562_v45  ;;  %vm518_vm5 = vcmp.ge.f32.partialorder %v464_v46, 0.0  ;;  %v565_v53 = vmul.f32 %v3398_v49, %v464_v46  ;;  %v456_v54 = vadd.f32 %v3393_v47, %v455_v50  ;;  %v827_v36 = vld [vmem:[#allocation2 + $0x83] ss:$4 sm:$0xff]  ;;  %v811_v38 = vld [vmem:[#allocation2 + $0x42] ss:$4 sm:$0xff] }
 0x128   :  { %775 = vst [vmem:[#allocation2 + $0x132] sm:$0xff] %v602_v52  ;;  %1316 = vmatmul.mubr.bf16.gmra.mxu1 %v917_v51  ;;  %v2912_v55 = vpop.f32.mrf.mxu0  ;;  %v844_v32 = vpack.c.bf16 %v809_v29, %v807_v31  ;;  %v850_v34 = vpack.c.bf16 %v825_v30, %v823_v33  ;;  %v829_v37 = vld [vmem:[#allocation2 + $0xa3] ss:$4 sm:$0xff]  ;;  %v849_v39 = vpack.c.bf16 %v813_v35, %v811_v38  ;;  %v815_v41 = vld [vmem:[#allocation2 + $0x82] ss:$4 sm:$0xff] }
 0x129   :  { %v605_v56 = vsel %vm518_vm5, %v464_v46, %v565_v53  ;;  %vm516_vm6 = vcmp.ge.f32.partialorder %v456_v54, 0.0  ;;  %v563_v57 = vmul.f32 %v3398_v49, %v456_v54  ;;  %v477_v58 = vadd.f32 %v2912_v55, %v3393_v47  ;;  %v817_v42 = vld [vmem:[#allocation2 + $0xa2] ss:$4 sm:$0xff]  ;;  %v896_v43 = vld [vmem:[#allocation2 + $0xf3] ss:$4 sm:$0xff] }
 0x12a   :  { %778 = vst [vmem:[#allocation2 + $0x14a] sm:$0xff] %v605_v56  ;;  %v468_v59 = vpop.f32.mrf.mxu0  ;;  %v855_v40 = vpack.c.bf16 %v829_v37, %v827_v36  ;;  %v854_v44 = vpack.c.bf16 %v817_v42, %v815_v41  ;;  %v894_v45 = vld [vmem:[#allocation2 + $0xd3] ss:$4 sm:$0xff]  ;;  %v884_v48 = vld [vmem:[#allocation2 + $0xf2] ss:$4 sm:$0xff] }
 0x12b   :  { %v603_v60 = vsel %vm516_vm6, %v456_v54, %v563_v57  ;;  %vm521_vm7 = vcmp.ge.f32.partialorder %v477_v58, 0.0  ;;  %v568_v61 = vmul.f32 %v3398_v49, %v477_v58  ;;  %v469_v62 = vadd.f32 %v3393_v47, %v468_v59  ;;  %v874_v9 = vld [vmem:[#allocation2 + $0x111] ss:$4 sm:$0xff]  ;;  %v910_v10 = vld [vmem:[#allocation2 + $0x114] ss:$4 sm:$0xff] }
 0x12c   :  { %776 = vst [vmem:[#allocation2 + $0x13a] sm:$0xff] %v603_v60  ;;  %v2913_v63 = vpop.f32.mrf.mxu0  ;;  %v862_v11 = vld [vmem:[#allocation2 + $0x110] ss:$4 sm:$0xff]  ;;  %v920_v46 = vpack.c.bf16 %v896_v43, %v894_v45  ;;  %v882_v51 = vld [vmem:[#allocation2 + $0xd2] ss:$4 sm:$0xff] }
 0x12d   :  { %v608_v0 = vsel %vm521_vm7, %v477_v58, %v568_v61  ;;  %vm519_vm8 = vcmp.ge.f32.partialorder %v469_v62, 0.0  ;;  %v566_v1 = vmul.f32 %v3398_v49, %v469_v62  ;;  %v480_v2 = vadd.f32 %v2913_v63, %v3393_v47  ;;  %v898_v53 = vld [vmem:[#allocation2 + $0x113] ss:$4 sm:$0xff]  ;;  %v886_v58 = vld [vmem:[#allocation2 + $0x112] ss:$4 sm:$0xff] }
 0x12e   :  { %781 = vst [vmem:[#allocation2 + $0x162] sm:$0xff] %v608_v0  ;;  %v471_v3 = vpop.f32.mrf.mxu0  ;;  %v919_v52 = vpack.c.bf16 %v884_v48, %v882_v51  ;;  %v904_v57 = vld [vmem:[#allocation2 + $0x173] ss:$4 sm:$0xff] }
 0x12f   :  { %v606_v4 = vsel %vm519_vm8, %v469_v62, %v566_v1  ;;  %vm522_vm9 = vcmp.ge.f32.partialorder %v480_v2, 0.0  ;;  %v569_v5 = vmul.f32 %v3398_v49, %v480_v2  ;;  %v472_v6 = vadd.f32 %v3393_v47, %v471_v3  ;;  %v916_v47 = vld [vmem:[#allocation2 + $0x174] ss:$4 sm:$0xff]  ;;  %v892_v62 = vld [vmem:[#allocation2 + $0x172] ss:$4 sm:$0xff] }
 0x130   :  { %779 = vst [vmem:[#allocation2 + $0x152] sm:$0xff] %v606_v4  ;;  %v3052_v0 = vld [vmem:[%s3731_s7 + $0x78] sm:$0xff]   ;;  %v3055_v3 = vld [vmem:[%s3731_s7 + $0x70] sm:$0xff]   ;;  %v3074_v21 = vld [vmem:[%s3731_s7] sm:$0xff]  }
 0x131   :  { %v609_v7 = vsel %vm522_vm9, %v480_v2, %v569_v5  ;;  %vm520_vm10 = vcmp.ge.f32.partialorder %v472_v6, 0.0  ;;  %v567_v8 = vmul.f32 %v3398_v49, %v472_v6  ;;  %v3053_v1 = vld [vmem:[%s3731_s7 + $0x38] sm:$0xff]   ;;  %2782 = vmatprep.subr.bf16.mxu0 %v3052_v0  ;;  %v3056_v4 = vld [vmem:[%s3731_s7 + $0x30] sm:$0xff]  }
 0x132   :  { %782 = vst [vmem:[#allocation2 + $0x16a] sm:$0xff] %v609_v7  ;;  %2783 = vmatpush3.bf16.msra.mxu0 %v3053_v1  ;;  %v3054_v2 = vld [vmem:[%s3731_s7 + $0xb8] sm:$0xff]   ;;  %v3057_v5 = vld [vmem:[%s3731_s7 + $0xb0] sm:$0xff]   ;;  %v3059_v7 = vld [vmem:[%s3731_s7 + $0x28] sm:$0xff]  }
 0x133   :  { %v607_v12 = vsel %vm520_vm10, %v472_v6, %v567_v8  ;;  %v876_v13 = vld [vmem:[#allocation2 + $0x131] ss:$4 sm:$0xff]  ;;  %v912_v14 = vld [vmem:[#allocation2 + $0x134] ss:$4 sm:$0xff]  ;;  %v900_v50 = vld [vmem:[#allocation2 + $0x133] ss:$4 sm:$0xff]  ;;  %2942 = vmatprep.subr.bf16.mxu1 %v3054_v2  ;;  %2784 = vmatprep.subr.bf16.mxu0 %v3055_v3 }
 0x134   :  { %v864_v15 = vld [vmem:[#allocation2 + $0x130] ss:$4 sm:$0xff]  ;;  %780 = vst [vmem:[#allocation2 + $0x15a] sm:$0xff] %v607_v12  ;;  %v923_v16 = vpack.c.bf16 %v876_v13, %v874_v9  ;;  %v926_v17 = vpack.c.bf16 %v912_v14, %v910_v10  ;;  %v925_v54 = vpack.c.bf16 %v900_v50, %v898_v53  ;;  %v888_v55 = vld [vmem:[#allocation2 + $0x132] ss:$4 sm:$0xff] }
 0x135   :  { %v922_v18 = vpack.c.bf16 %v864_v15, %v862_v11  ;;  %v924_v59 = vpack.c.bf16 %v888_v55, %v886_v58  ;;  %v3058_v6 = vld [vmem:[%s3731_s7 + $0x68] sm:$0xff]   ;;  %v3061_v9 = vld [vmem:[%s3731_s7 + $0x60] sm:$0xff]   ;;  %v3064_v12 = vld [vmem:[%s3731_s7 + $0x58] sm:$0xff]  }
 0x136   :  { %1323 = vmatprep.mubr.bf16.mxu1 %v923_v16  ;;  %2938 = vmatprep.mubr.bf16.mxu0 %v926_v17  ;;  %v3060_v8 = vld [vmem:[%s3731_s7 + $0xa8] sm:$0xff]   ;;  %v3062_v10 = vld [vmem:[%s3731_s7 + $0x20] sm:$0xff]   ;;  %v3065_v13 = vld [vmem:[%s3731_s7 + $0x18] sm:$0xff]  }
 0x137   :  { %1324 = vmatmul.mubr.bf16.gmra.mxu1 %v922_v18  ;;  %2785 = vmatpush3.bf16.msra.mxu0 %v3056_v4  ;;  %v3063_v11 = vld [vmem:[%s3731_s7 + $0xa0] sm:$0xff]   ;;  %v3066_v14 = vld [vmem:[%s3731_s7 + $0x98] sm:$0xff]   ;;  %v3067_v15 = vld [vmem:[%s3731_s7 + $0x50] sm:$0xff]  }
 0x138   :  { %2786 = vmatprep.subr.bf16.mxu0 %v3058_v6  ;;  %v3068_v16 = vld [vmem:[%s3731_s7 + $0x10] sm:$0xff]   ;;  %v3070_v18 = vld [vmem:[%s3731_s7 + $0x48] sm:$0xff]   ;;  %v3593_v4 = vld [vmem:[%s3730_s6] ss:$0 sm:$0xff] }
 0x139   :  { %v880_v19 = vld [vmem:[#allocation2 + $0x171] ss:$4 sm:$0xff]  ;;  %v868_v20 = vld [vmem:[#allocation2 + $0x170] ss:$4 sm:$0xff] }
 0x13a   :  { %v3069_v17 = vld [vmem:[%s3731_s7 + $0x90] sm:$0xff]  }
 0x13b   :  { %v878_v49 = vld [vmem:[#allocation2 + $0x151] ss:$4 sm:$0xff]  ;;  %v914_v22 = vld [vmem:[#allocation2 + $0x154] ss:$4 sm:$0xff]  ;;  %v902_v56 = vld [vmem:[#allocation2 + $0x153] ss:$4 sm:$0xff]  ;;  %2787 = vmatpush3.bf16.msra.mxu0 %v3059_v7 }
 0x13c   :  { %v866_v23 = vld [vmem:[#allocation2 + $0x150] ss:$4 sm:$0xff]  ;;  %v928_v24 = vpack.c.bf16 %v880_v19, %v878_v49  ;;  %v931_v25 = vpack.c.bf16 %v916_v47, %v914_v22  ;;  %v930_v60 = vpack.c.bf16 %v904_v57, %v902_v56  ;;  %v890_v61 = vld [vmem:[#allocation2 + $0x152] ss:$4 sm:$0xff]  ;;  %2788 = vmatprep.subr.bf16.mxu0 %v3061_v9 }
 0x13d   :  { %v927_v26 = vpack.c.bf16 %v868_v20, %v866_v23  ;;  %v929_v63 = vpack.c.bf16 %v892_v62, %v890_v61  ;;  %v3071_v47 = vld [vmem:[%s3731_s7 + $0x8] sm:$0xff]   ;;  %v3073_v20 = vld [vmem:[%s3731_s7 + $0x40] sm:$0xff]  }
 0x13e   :  { %1331 = vmatprep.mubr.bf16.mxu1 %v928_v24  ;;  %2939 = vmatmul.mubr.bf16.gmra.mxu0 %v931_v25  ;;  %v3072_v19 = vld [vmem:[%s3731_s7 + $0x88] sm:$0xff]   ;;  %v3075_v49 = vld [vmem:[%s3731_s7 + $0x80] sm:$0xff]  }
 0x13f   :  { %1332 = vmatmul.mubr.bf16.gmra.mxu1 %v927_v26  ;;  %2789 = vmatpush3.bf16.msra.mxu0 %v3062_v10 }
 0x140   :  { %1372 = vmatprep.mubr.bf16.mxu1 %v845_v28  ;;  %2790 = vmatprep.subr.bf16.mxu0 %v3064_v12 }
 0x143   :  { %2791 = vmatpush3.bf16.msra.mxu0 %v3065_v13 }
 0x144   :  { %2792 = vmatprep.subr.bf16.mxu0 %v3067_v15 }
 0x147   :  { %1373 = vmatmul.mubr.bf16.vlgmr.msra.gmra.mxu1 %v844_v32  ;;  %2793 = vmatpush3.bf16.msra.mxu0 %v3068_v16 }
 0x148   :  { %1380 = vmatprep.mubr.bf16.mxu1 %v850_v34  ;;  %2943 = vmatpush3.bf16.msra.mxu1 %v3054_v2 }
 0x149   :  { %2944 = vmatprep.subr.bf16.mxu1 %v3057_v5  ;;  %2794 = vmatprep.subr.bf16.mxu0 %v3070_v18 }
 0x14b   :  { %2795 = vmatpush3.bf16.msra.mxu0 %v3071_v47 }
 0x14c   :  { %2945 = vmatpush3.bf16.msra.mxu1 %v3057_v5  ;;  %2796 = vmatprep.subr.bf16.mxu0 %v3073_v20 }
 0x14d   :  { %2946 = vmatprep.subr.bf16.mxu1 %v3060_v8 }
 0x14f   :  { %1381 = vmatmul.mubr.bf16.gmra.mxu1 %v849_v39  ;;  %2797 = vmatpush3.bf16.msra.mxu0 %v3074_v21 }
 0x150   :  { %1388 = vmatprep.mubr.bf16.mxu1 %v855_v40  ;;  %2947 = vmatpush3.bf16.msra.mxu1 %v3060_v8 }
 0x151   :  { %2948 = vmatprep.subr.bf16.mxu1 %v3063_v11 }
 0x154   :  { %2949 = vmatpush3.bf16.msra.mxu1 %v3063_v11 }
 0x155   :  { %2950 = vmatprep.subr.bf16.mxu1 %v3066_v14 }
 0x157   :  { %1389 = vmatmul.mubr.bf16.gmra.mxu1 %v854_v44 }
 0x158   :  { %1396 = vmatprep.mubr.bf16.mxu1 %v920_v46  ;;  %2951 = vmatpush3.bf16.msra.mxu1 %v3066_v14 }
 0x159   :  { %2952 = vmatprep.subr.bf16.mxu1 %v3069_v17 }
 0x15c   :  { %2953 = vmatpush3.bf16.msra.mxu1 %v3069_v17 }
 0x15d   :  { %2954 = vmatprep.subr.bf16.mxu1 %v3072_v19 }
 0x15f   :  { %1397 = vmatmul.mubr.bf16.gmra.mxu1 %v919_v52 }
 0x160   :  { %1404 = vmatprep.mubr.bf16.mxu1 %v925_v54  ;;  %2955 = vmatpush3.bf16.msra.mxu1 %v3072_v19 }
 0x161   :  { %2956 = vmatprep.subr.bf16.mxu1 %v3075_v49 }
 0x164   :  { %2957 = vmatpush3.bf16.msra.mxu1 %v3075_v49 }
 0x167   :  { %1405 = vmatmul.mubr.bf16.gmra.mxu1 %v924_v59 }
 0x168   :  { %1412 = vmatprep.mubr.bf16.mxu1 %v930_v60  ;;  %v3587_v60 = vld [vmem:[%s3729_s5] ss:$0 sm:$0xff] }
 0x16f   :  { %1413 = vmatmul.mubr.bf16.gmra.mxu1 %v929_v63 }
 0x1c0   :  { %v2680_v22 = vpop.f32.mrf.mxu1 }
 0x1c2   :  { %v2681_v23 = vpop.f32.mrf.mxu1 }
 0x1c3   :  { %v2682_v59 = vadd.f32 %v2681_v23, %v2680_v22 }
 0x1c4   :  { %v2683_v24 = vpop.f32.mrf.mxu1 }
 0x1c5   :  { %v1294_v63 = vadd.f32 %v2682_v59, %v3587_v60 }
 0x1c6   :  { %v2684_v25 = vpop.f32.mrf.mxu1 }
 0x1c7   :  { %v2685_v0 = vadd.f32 %v2684_v25, %v2683_v24 }
 0x1c9   :  { %v1297_v6 = vadd.f32 %v2685_v0, %v3587_v60 }
 0x1ce   :  { %v2932_v30 = vpop.f32.mrf.mxu0 }
 0x1d0   :  { %v2686_v26 = vpop.f32.mrf.mxu1  ;;  %v1455_v33 = vpop.f32.mrf.mxu0 }
 0x1d2   :  { %v2687_v27 = vpop.f32.mrf.mxu1  ;;  %v3552_v36 = vpop.f32.mrf.mxu0 }
 0x1d3   :  { %v2688_v7 = vadd.f32 %v2687_v27, %v2686_v26 }
 0x1d4   :  { %v2689_v28 = vpop.f32.mrf.mxu1  ;;  %v1458_v37 = vpop.f32.mrf.mxu0 }
 0x1d5   :  { %v1302_v15 = vadd.f32 %v2688_v7, %v3587_v60 }
 0x1d6   :  { %v2690_v29 = vpop.f32.mrf.mxu1 }
 0x1d7   :  { %v2691_v13 = vadd.f32 %v2690_v29, %v2689_v28 }
 0x1d8   :  { %v2692_v31 = vpop.f32.mrf.mxu1 }
 0x1d9   :  { %v1305_v21 = vadd.f32 %v2691_v13, %v3587_v60 }
 0x1da   :  { %v2693_v32 = vpop.f32.mrf.mxu1 }
 0x1db   :  { %v2694_v22 = vadd.f32 %v2693_v32, %v2692_v31 }
 0x1dc   :  { %v2695_v34 = vpop.f32.mrf.mxu1 }
 0x1de   :  { %v2696_v35 = vpop.f32.mrf.mxu1 }
 0x1e6   :  { %v3554_v38 = vpop.f32.mrf.mxu0 }
 0x1e8   :  { %v3556_v39 = vpop.f32.mrf.mxu0  ;;  %v3558_v40 = vpop.f32.mrf.mxu1 }
 0x1ea   :  { %v3560_v41 = vpop.f32.mrf.mxu0  ;;  %v3562_v43 = vpop.f32.mrf.mxu1 }
 0x1ec   :  { %v1474_v42 = vpop.f32.mrf.mxu0  ;;  %v3564_v44 = vpop.f32.mrf.mxu1 }
 0x1ee   :  { %v3566_v45 = vpop.f32.mrf.mxu1 }
 0x1f7   :  { %v3568_v46 = vpop.f32.mrf.mxu1 }
 0x1f9   :  { %v3570_v48 = vpop.f32.mrf.mxu1 }
 0x1fa   :  { %v2706_v7 = vadd.f32 %v3570_v48, %v3568_v46 }
 0x1fb   :  { %v3572_v50 = vpop.f32.mrf.mxu1 }
 0x1fd   :  { %v3574_v51 = vpop.f32.mrf.mxu1 }
 0x1fe   :  { %v3576_v52 = vpop.f32.mrf.mxu0 }
 0x1ff   :  { %v3578_v53 = vpop.f32.mrf.mxu1 }
 0x200   :  { %v3580_v54 = vpop.f32.mrf.mxu0 }
 0x201   :  { %v3582_v55 = vpop.f32.mrf.mxu1 }
 0x202   :  { %v2941_v56 = vpop.f32.mrf.mxu0 }
 0x203   :  { %v2713_v57 = vpop.f32.mrf.mxu1  ;;  %v2700_v56 = vadd.f32 %v3562_v43, %v3558_v40 }
 0x205   :  { %v2714_v58 = vpop.f32.mrf.mxu1 }
 0x207   :  { %v2732_v61 = vpop.f32.mrf.mxu1 }
 0x209   :  { %v2733_v62 = vpop.f32.mrf.mxu1 }
 0x20a   :  { %v2734_v1 = vadd.f32 %v2733_v62, %v2732_v61  ;;  %v1318_v62 = vadd.f32 %v2700_v56, %v3587_v60 }
 0x20b   :  { %v2735_v2 = vpop.f32.mrf.mxu1 }
 0x20c   :  { %v1375_v3 = vadd.f32 %v2734_v1, %v1294_v63  ;;  %v2703_v63 = vadd.f32 %v3566_v45, %v3564_v44 }
 0x20d   :  { %v2736_v5 = vpop.f32.mrf.mxu1 }
 0x20e   :  { %v1456_v8 = vadd.f32 %v1455_v33, %v1375_v3  ;;  %v2737_v9 = vadd.f32 %v2736_v5, %v2735_v2  ;;  %v1310_v33 = vadd.f32 %v2694_v22, %v3587_v60 }
 0x20f   :  { %v2738_v10 = vpop.f32.mrf.mxu1 }
 0x210   :  { %vm1502_vm11 = vcmp.ge.f32.partialorder %v1456_v8, 0.0  ;;  %v1521_v11 = vmul.f32 %v3593_v4, %v1456_v8  ;;  %v1378_v12 = vadd.f32 %v2737_v9, %v1297_v6  ;;  %v1321_v6 = vadd.f32 %v2703_v63, %v3587_v60 }
 0x211   :  { %v2739_v14 = vpop.f32.mrf.mxu1 }
 0x212   :  { %v1533_v16 = vsel %vm1502_vm11, %v1456_v8, %v1521_v11  ;;  %v1459_v17 = vadd.f32 %v1458_v37, %v1378_v12  ;;  %v2740_v18 = vadd.f32 %v2739_v14, %v2738_v10 }
 0x213   :  { %1577 = vst [vmem:[#allocation3 + $0x1] sm:$0xff] %v1533_v16  ;;  %v2741_v47 = vpop.f32.mrf.mxu1 }
 0x214   :  { %vm1503_vm12 = vcmp.ge.f32.partialorder %v1459_v17, 0.0  ;;  %v1522_v19 = vmul.f32 %v3593_v4, %v1459_v17  ;;  %v1383_v20 = vadd.f32 %v2740_v18, %v1302_v15  ;;  %v1617_v18 = vld [vmem:[#allocation3 + $0x32] ss:$2 sm:$0xff] }
 0x215   :  { %v2742_v49 = vpop.f32.mrf.mxu1 }
 0x216   :  { %v1534_v23 = vsel %vm1503_vm12, %v1459_v17, %v1522_v19  ;;  %v1464_v24 = vadd.f32 %v2932_v30, %v1383_v20  ;;  %v2743_v25 = vadd.f32 %v2742_v49, %v2741_v47  ;;  %v1609_v17 = vld [vmem:[#allocation3 + $0x31] ss:$2 sm:$0xff]  ;;  %v2709_v47 = vadd.f32 %v3574_v51, %v3572_v50 }
 0x217   :  { %1578 = vst [vmem:[#allocation3 + $0x9] sm:$0xff] %v1534_v23  ;;  %v2744_v26 = vpop.f32.mrf.mxu1 }
 0x218   :  { %vm1504_vm13 = vcmp.ge.f32.partialorder %v1464_v24, 0.0  ;;  %v1523_v27 = vmul.f32 %v3593_v4, %v1464_v24  ;;  %v1386_v28 = vadd.f32 %v2743_v25, %v1305_v21  ;;  %v1329_v51 = vadd.f32 %v2709_v47, %v3587_v60  ;;  %v3083_v47 = vld [vmem:[#allocation7 + $0x20] sm:$0xff]  }
 0x219   :  { %v2745_v29 = vpop.f32.mrf.mxu1 }
 0x21a   :  { %v1535_v34 = vsel %vm1504_vm13, %v1464_v24, %v1523_v27  ;;  %v1467_v35 = vadd.f32 %v3552_v36, %v1386_v28  ;;  %v2746_v37 = vadd.f32 %v2745_v29, %v2744_v26  ;;  %v1601_v28 = vld [vmem:[#allocation3 + $0x30] ss:$2 sm:$0xff] }
 0x21b   :  { %1579 = vst [vmem:[#allocation3 + $0x11] sm:$0xff] %v1535_v34  ;;  %v2747_v42 = vpop.f32.mrf.mxu1 }
 0x21c   :  { %vm1505_vm14 = vcmp.ge.f32.partialorder %v1467_v35, 0.0  ;;  %v1524_v31 = vmul.f32 %v3593_v4, %v1467_v35  ;;  %v1391_v30 = vadd.f32 %v2746_v37, %v1310_v33 }
 0x21d   :  { %v2748_v32 = vpop.f32.mrf.mxu1 }
 0x21e   :  { %v1536_v57 = vsel %vm1505_vm14, %v1467_v35, %v1524_v31  ;;  %v1472_v58 = vadd.f32 %v3556_v39, %v1391_v30  ;;  %v1603_v43 = vld [vmem:[#allocation3 + $0x1] ss:$2 sm:$0xff]  ;;  %v1611_v5 = vld [vmem:[#allocation3 + $0x2] ss:$2 sm:$0xff]  ;;  %v1490_v30 = vpop.f32.mrf.mxu0 }
 0x21f   :  { %1580 = vst [vmem:[#allocation3 + $0x19] sm:$0xff] %v1536_v57  ;;  %v2750_v59 = vpop.f32.mrf.mxu1  ;;  %v1595_v39 = vld [vmem:[#allocation3] ss:$2 sm:$0xff] }
 0x220   :  { %vm1506_vm15 = vcmp.ge.f32.partialorder %v1472_v58, 0.0  ;;  %v1525_v61 = vmul.f32 %v3593_v4, %v1472_v58 }
 0x221   :  { %v2751_v36 = vpop.f32.mrf.mxu1 }
 0x222   :  { %v1537_v0 = vsel %vm1506_vm15, %v1472_v58, %v1525_v61  ;;  %v2752_v1 = vadd.f32 %v2751_v36, %v2750_v59 }
 0x223   :  { %1581 = vst [vmem:[#allocation3 + $0x21] sm:$0xff] %v1537_v0  ;;  %v2753_v2 = vpop.f32.mrf.mxu1 }
 0x224   :  { %v1399_v3 = vadd.f32 %v2752_v1, %v1318_v62 }
 0x225   :  { %v2754_v40 = vpop.f32.mrf.mxu1 }
 0x226   :  { %v1480_v8 = vadd.f32 %v3554_v38, %v1399_v3  ;;  %v2755_v9 = vadd.f32 %v2754_v40, %v2753_v2  ;;  %v1605_v10 = vld [vmem:[#allocation3 + $0x11] ss:$2 sm:$0xff]  ;;  %v1613_v11 = vld [vmem:[#allocation3 + $0x12] ss:$2 sm:$0xff]  ;;  %v1326_v38 = vadd.f32 %v2706_v7, %v3587_v60  ;;  %v1639_v7 = vld [vmem:[#allocation3 + $0x81] ss:$2 sm:$0xff] }
 0x227   :  { %v1597_v44 = vld [vmem:[#allocation3 + $0x10] ss:$2 sm:$0xff]  ;;  %v2756_v45 = vpop.f32.mrf.mxu1  ;;  %v1619_v12 = vpack.c.bf16 %v1605_v10, %v1603_v43  ;;  %v1620_v13 = vpack.c.bf16 %v1613_v11, %v1611_v5 }
 0x228   :  { %v1618_v14 = vpack.c.bf16 %v1597_v44, %v1595_v39  ;;  %vm1508_vm1 = vcmp.ge.f32.partialorder %v1480_v8, 0.0  ;;  %v1527_v15 = vmul.f32 %v3593_v4, %v1480_v8  ;;  %v1402_v16 = vadd.f32 %v2755_v9, %v1321_v6  ;;  %v1631_v44 = vld [vmem:[#allocation3 + $0x80] ss:$2 sm:$0xff] }
 0x229   :  { %v2757_v46 = vpop.f32.mrf.mxu1  ;;  %1885 = vmatprep.mubr.bf16.mxu0 %v1619_v12  ;;  %2958 = vmatprep.mubr.bf16.mxu1 %v1620_v13  ;;  %v3076_v12 = vld [vmem:[#allocation7 + $0x78] sm:$0xff]  }
 0x22a   :  { %v1539_v48 = vsel %vm1508_vm1, %v1480_v8, %v1527_v15  ;;  %v1483_v19 = vadd.f32 %v3560_v41, %v1402_v16  ;;  %v2758_v20 = vadd.f32 %v2757_v46, %v2756_v45  ;;  %1886 = vmatmul.mubr.bf16.vlgmr.msra.gmra.mxu0 %v1618_v14  ;;  %v1607_v21 = vld [vmem:[#allocation3 + $0x21] ss:$2 sm:$0xff]  ;;  %v1615_v49 = vld [vmem:[#allocation3 + $0x22] ss:$2 sm:$0xff]  ;;  %v2712_v41 = vadd.f32 %v3582_v55, %v3578_v53  ;;  %v3077_v13 = vld [vmem:[#allocation7 + $0x38] sm:$0xff]  }
 0x22b   :  { %1589 = vst [vmem:[#allocation3 + $0x51] sm:$0xff] %v1539_v48  ;;  %v2759_v22 = vpop.f32.mrf.mxu1  ;;  %v1622_v23 = vpack.c.bf16 %v1609_v17, %v1607_v21  ;;  %v1623_v24 = vpack.c.bf16 %v1617_v18, %v1615_v49  ;;  %v1599_v27 = vld [vmem:[#allocation3 + $0x20] ss:$2 sm:$0xff]  ;;  %2834 = vmatprep.subr.bf16.mxu0 %v3076_v12  ;;  %v3078_v14 = vld [vmem:[#allocation7 + $0x70] sm:$0xff]   ;;  %v3084_v46 = vld [vmem:[#allocation7 + $0x58] sm:$0xff]  }
 0x22c   :  { %vm1509_vm2 = vcmp.ge.f32.partialorder %v1483_v19, 0.0  ;;  %v1528_v25 = vmul.f32 %v3593_v4, %v1483_v19  ;;  %v1407_v50 = vadd.f32 %v2758_v20, %v1326_v38  ;;  %v1621_v31 = vpack.c.bf16 %v1601_v28, %v1599_v27  ;;  %v1647_v8 = vld [vmem:[#allocation3 + $0x82] ss:$2 sm:$0xff]  ;;  %2835 = vmatpush3.bf16.msra.mxu0 %v3077_v13  ;;  %v3085_v38 = vld [vmem:[#allocation7 + $0x18] sm:$0xff]  }
 0x22d   :  { %v2760_v26 = vpop.f32.mrf.mxu1  ;;  %1893 = vmatprep.mubr.bf16.mxu0 %v1622_v23  ;;  %2959 = vmatmul.mubr.bf16.vlgmr.msra.gmra.mxu1 %v1623_v24  ;;  %v1334_v56 = vadd.f32 %v2712_v41, %v3587_v60  ;;  %v3079_v15 = vld [vmem:[#allocation7 + $0x30] sm:$0xff]   ;;  %v3080_v16 = vld [vmem:[#allocation7 + $0x68] sm:$0xff]   ;;  %v3082_v18 = vld [vmem:[#allocation7 + $0x60] sm:$0xff]  }
 0x22e   :  { %v1540_v29 = vsel %vm1509_vm2, %v1483_v19, %v1528_v25  ;;  %v1488_v33 = vadd.f32 %v3580_v54, %v1407_v50  ;;  %v2761_v34 = vadd.f32 %v2760_v26, %v2759_v22  ;;  %2836 = vmatprep.subr.bf16.mxu0 %v3078_v14  ;;  %v3081_v17 = vld [vmem:[#allocation7 + $0x28] sm:$0xff]   ;;  %v3086_v48 = vld [vmem:[#allocation7 + $0x50] sm:$0xff]   ;;  %v3088_v20 = vld [vmem:[#allocation7 + $0xb8] sm:$0xff]  }
 0x22f   :  { %1590 = vst [vmem:[#allocation3 + $0x59] sm:$0xff] %v1540_v29  ;;  %v2762_v35 = vpop.f32.mrf.mxu1  ;;  %v3087_v19 = vld [vmem:[#allocation7 + $0x10] sm:$0xff]   ;;  %2966 = vmatprep.subr.bf16.mxu1 %v3088_v20  ;;  %v3089_v21 = vld [vmem:[#allocation7 + $0x48] sm:$0xff]   ;;  %v3092_v23 = vld [vmem:[#allocation7 + $0x40] sm:$0xff]  }
 0x230   :  { %vm1510_vm3 = vcmp.ge.f32.partialorder %v1488_v33, 0.0  ;;  %v1529_v37 = vmul.f32 %v3593_v4, %v1488_v33  ;;  %v1410_v42 = vadd.f32 %v2761_v34, %v1329_v51  ;;  %2837 = vmatpush3.bf16.msra.mxu0 %v3079_v15  ;;  %2967 = vmatpush3.bf16.msra.mxu1 %v3088_v20  ;;  %v3090_v49 = vld [vmem:[#allocation7 + $0x8] sm:$0xff]   ;;  %v3091_v22 = vld [vmem:[#allocation7 + $0xb0] sm:$0xff]   ;;  %v3093_v24 = vld [vmem:[#allocation7] sm:$0xff]  }
 0x231   :  { %v2763_v32 = vpop.f32.mrf.mxu1  ;;  %2838 = vmatprep.subr.bf16.mxu0 %v3080_v16  ;;  %2968 = vmatprep.subr.bf16.mxu1 %v3091_v22  ;;  %v3094_v25 = vld [vmem:[#allocation7 + $0xa8] sm:$0xff]   ;;  %v3095_v50 = vld [vmem:[#allocation7 + $0xa0] sm:$0xff]   ;;  %v3096_v51 = vld [vmem:[#allocation7 + $0x98] sm:$0xff]  }
 0x232   :  { %v1541_v57 = vsel %vm1510_vm3, %v1488_v33, %v1529_v37  ;;  %v1491_v58 = vadd.f32 %v1490_v30, %v1410_v42  ;;  %v2764_v59 = vadd.f32 %v2763_v32, %v2762_v35  ;;  %1894 = vmatmul.mubr.bf16.gmra.mxu0 %v1621_v31  ;;  %v3097_v26 = vld [vmem:[#allocation7 + $0x90] sm:$0xff]   ;;  %v3098_v27 = vld [vmem:[#allocation7 + $0x88] sm:$0xff]   ;;  %v3099_v28 = vld [vmem:[#allocation7 + $0x80] sm:$0xff]   ;;  %v610_v30 = vlaneseq }
 0x233   :  { %1591 = vst [vmem:[#allocation3 + $0x61] sm:$0xff] %v1541_v57  ;;  %v2765_v53 = vpop.f32.mrf.mxu1  ;;  %v3633_v33 = vld [vmem:[%s3732_s8] ss:$0 sm:$0xff] }
 0x234   :  { %vm1511_vm4 = vcmp.ge.f32.partialorder %v1491_v58, 0.0  ;;  %v1530_v54 = vmul.f32 %v3593_v4, %v1491_v58  ;;  %v1415_v55 = vadd.f32 %v2764_v59, %v1334_v56  ;;  %2839 = vmatpush3.bf16.msra.mxu0 %v3081_v17  ;;  %2969 = vmatpush3.bf16.msra.mxu1 %v3091_v22  ;;  %v3639_v32 = vld [vmem:[%s3733_s9] ss:$0 sm:$0xff] }
 0x235   :  { %v2766_v61 = vpop.f32.mrf.mxu1  ;;  %2840 = vmatprep.subr.bf16.mxu0 %v3082_v18  ;;  %2970 = vmatprep.subr.bf16.mxu1 %v3094_v25 }
 0x236   :  { %v1542_v36 = vsel %vm1511_vm4, %v1491_v58, %v1530_v54  ;;  %v1496_v62 = vadd.f32 %v3576_v52, %v1415_v55  ;;  %v1633_v60 = vld [vmem:[#allocation3 + $0x51] ss:$2 sm:$0xff]  ;;  %v1641_v1 = vld [vmem:[#allocation3 + $0x52] ss:$2 sm:$0xff] }
 0x237   :  { %1592 = vst [vmem:[#allocation3 + $0x69] sm:$0xff] %v1542_v36  ;;  %v1625_v2 = vld [vmem:[#allocation3 + $0x50] ss:$2 sm:$0xff]  ;;  %v611_v36 = vshrl.u32 %v610_v30, 7 }
 0x238   :  { %vm1512_vm5 = vcmp.ge.f32.partialorder %v1496_v62, 0.0  ;;  %v1531_v63 = vmul.f32 %v3593_v4, %v1496_v62  ;;  %2841 = vmatpush3.bf16.msra.mxu0 %v3083_v47  ;;  %2971 = vmatpush3.bf16.msra.mxu1 %v3094_v25 }
 0x239   :  { %2842 = vmatprep.subr.bf16.mxu0 %v3084_v46  ;;  %2972 = vmatprep.subr.bf16.mxu1 %v3095_v50 }
 0x23a   :  { %v1543_v0 = vsel %vm1512_vm5, %v1496_v62, %v1531_v63 }
 0x23b   :  { %1593 = vst [vmem:[#allocation3 + $0x71] sm:$0xff] %v1543_v0 }
 0x23c   :  { %2843 = vmatpush3.bf16.msra.mxu0 %v3085_v38  ;;  %2973 = vmatpush3.bf16.msra.mxu1 %v3095_v50 }
 0x23d   :  { %2844 = vmatprep.subr.bf16.mxu0 %v3086_v48  ;;  %2974 = vmatprep.subr.bf16.mxu1 %v3096_v51 }
 0x23e   :  { %v1635_v3 = vld [vmem:[#allocation3 + $0x61] ss:$2 sm:$0xff]  ;;  %v1643_v40 = vld [vmem:[#allocation3 + $0x62] ss:$2 sm:$0xff] }
 0x23f   :  { %v1627_v43 = vld [vmem:[#allocation3 + $0x60] ss:$2 sm:$0xff]  ;;  %v1649_v5 = vpack.c.bf16 %v1635_v3, %v1633_v60  ;;  %v1650_v39 = vpack.c.bf16 %v1643_v40, %v1641_v1  ;;  %v613_v3 = vadd.s32 16, %v611_v36 }
 0x240   :  { %v1648_v6 = vpack.c.bf16 %v1627_v43, %v1625_v2  ;;  %2845 = vmatpush3.bf16.msra.mxu0 %v3087_v19  ;;  %2975 = vmatpush3.bf16.msra.mxu1 %v3096_v51 }
 0x241   :  { %1901 = vmatprep.mubr.bf16.mxu0 %v1649_v5  ;;  %2962 = vmatprep.mubr.bf16.mxu1 %v1650_v39  ;;  %vm2016_vm9 = vcmp.lt.s32.totalorder %v613_v3, 20 }
 0x242   :  { %1902 = vmatmul.mubr.bf16.gmra.mxu0 %v1648_v6  ;;  %v1637_v52 = vld [vmem:[#allocation3 + $0x71] ss:$2 sm:$0xff]  ;;  %v1645_v9 = vld [vmem:[#allocation3 + $0x72] ss:$2 sm:$0xff]  ;;  %2846 = vmatprep.subr.bf16.mxu0 %v3089_v21 }
 0x243   :  { %v1652_v10 = vpack.c.bf16 %v1639_v7, %v1637_v52  ;;  %v1653_v4 = vpack.c.bf16 %v1647_v8, %v1645_v9  ;;  %v1629_v11 = vld [vmem:[#allocation3 + $0x70] ss:$2 sm:$0xff]  ;;  %2976 = vmatprep.subr.bf16.mxu1 %v3097_v26 }
 0x244   :  { %v1651_v45 = vpack.c.bf16 %v1631_v44, %v1629_v11  ;;  %2847 = vmatpush3.bf16.msra.mxu0 %v3090_v49  ;;  %2977 = vmatpush3.bf16.msra.mxu1 %v3097_v26 }
 0x245   :  { %1909 = vmatprep.mubr.bf16.mxu0 %v1652_v10  ;;  %2963 = vmatmul.mubr.bf16.gmra.mxu1 %v1653_v4 }
 0x246   :  { %2848 = vmatprep.subr.bf16.mxu0 %v3092_v23  ;;  %2978 = vmatprep.subr.bf16.mxu1 %v3098_v27 }
 0x248   :  { %2849 = vmatpush3.bf16.msra.mxu0 %v3093_v24  ;;  %2979 = vmatpush3.bf16.msra.mxu1 %v3098_v27 }
 0x249   :  { %2980 = vmatprep.subr.bf16.mxu1 %v3099_v28 }
 0x24a   :  { %1910 = vmatmul.mubr.bf16.gmra.mxu0 %v1651_v45 }
 0x24c   :  { %2981 = vmatpush3.bf16.msra.mxu1 %v3099_v28 }
 0x2ea   :  { %v2798_v41 = vpop.f32.mrf.mxu0 }
 0x2ec   :  { %v2799_v29 = vpop.f32.mrf.mxu0 }
 0x2ed   :  { %v2800_v34 = vadd.f32 %v2799_v29, %v2798_v41  ;;  %v2960_v35 = vpop.f32.mrf.mxu1 }
 0x2ee   :  { %v2801_v37 = vpop.f32.mrf.mxu0 }
 0x2ef   :  { %v1888_v42 = vadd.f32 %v2800_v34, %v3633_v33  ;;  %v1952_v31 = vpop.f32.mrf.mxu1 }
 0x2f0   :  { %v2802_v56 = vpop.f32.mrf.mxu0 }
 0x2f1   :  { %v1953_v57 = vadd.f32 %v1952_v31, %v1888_v42  ;;  %v2803_v58 = vadd.f32 %v2802_v56, %v2801_v37  ;;  %v2961_v59 = vpop.f32.mrf.mxu1 }
 0x2f2   :  { %v2804_v53 = vpop.f32.mrf.mxu0 }
 0x2f3   :  { %vm1983_vm6 = vcmp.ge.f32.partialorder %v1953_v57, 0.0  ;;  %v1998_v54 = vmul.f32 %v3639_v32, %v1953_v57  ;;  %v1891_v55 = vadd.f32 %v2803_v58, %v3633_v33  ;;  %v1955_v61 = vpop.f32.mrf.mxu1 }
 0x2f4   :  { %v2805_v62 = vpop.f32.mrf.mxu0 }
 0x2f5   :  { %v2006_v63 = vsel %vm1983_vm6, %v1953_v57, %v1998_v54  ;;  %v1956_v0 = vadd.f32 %v1955_v61, %v1891_v55  ;;  %v2806_v60 = vadd.f32 %v2805_v62, %v2804_v53 }
 0x2f6   :  { %2034 = vst [vmem:[#allocation4 + $0x1] sm:$0xff] %v2006_v63  ;;  %v2807_v1 = vpop.f32.mrf.mxu0  ;;  %v2609_v63 = vld [vmem:[%s3735_s11] ss:$0 sm:$0xff] }
 0x2f7   :  { %vm1984_vm7 = vcmp.ge.f32.partialorder %v1956_v0, 0.0  ;;  %v1999_v2 = vmul.f32 %v3639_v32, %v1956_v0  ;;  %v1896_v40 = vadd.f32 %v2806_v60, %v3633_v33 }
 0x2f8   :  { %v2808_v43 = vpop.f32.mrf.mxu0 }
 0x2f9   :  { %v2007_v5 = vsel %vm1984_vm7, %v1956_v0, %v1999_v2  ;;  %v1961_v39 = vadd.f32 %v2960_v35, %v1896_v40  ;;  %v2634_v40 = vld [vmem:[%s3736_s12] ss:$0 sm:$0xff] }
 0x2fa   :  { %2035 = vst [vmem:[#allocation4 + $0x9] sm:$0xff] %v2007_v5 }
 0x2fb   :  { %vm1985_vm8 = vcmp.ge.f32.partialorder %v1961_v39, 0.0  ;;  %v2000_v6 = vmul.f32 %v3639_v32, %v1961_v39 }
 0x2fd   :  { %v2008_v7 = vsel %vm1985_vm8, %v1961_v39, %v2000_v6 }
 0x2fe   :  { %v2032_v8 = vsel %vm2016_vm9, %v2008_v7, 0.0 }
 0x2ff   :  { %2036 = vst [vmem:[#allocation4 + $0x11] sm:$0xff] %v2032_v8 }
 0x301   :  { %v2050_v11 = vld [vmem:[#allocation4 + $0x1] ss:$2 sm:$0xff]  ;;  %v2054_v44 = vld [vmem:[#allocation4 + $0x2] ss:$2 sm:$0xff] }
 0x302   :  { %v2810_v52 = vpop.f32.mrf.mxu0  ;;  %v2046_v45 = vld [vmem:[#allocation4] ss:$2 sm:$0xff] }
 0x304   :  { %v2811_v9 = vpop.f32.mrf.mxu0 }
 0x305   :  { %v2812_v10 = vadd.f32 %v2811_v9, %v2810_v52  ;;  %v2964_v4 = vpop.f32.mrf.mxu1 }
 0x306   :  { %v2813_v12 = vpop.f32.mrf.mxu0  ;;  %v2052_v13 = vld [vmem:[#allocation4 + $0x11] ss:$2 sm:$0xff]  ;;  %v2056_v14 = vld [vmem:[#allocation4 + $0x12] ss:$2 sm:$0xff] }
 0x307   :  { %v2048_v15 = vld [vmem:[#allocation4 + $0x10] ss:$2 sm:$0xff]  ;;  %v1904_v16 = vadd.f32 %v2812_v10, %v3633_v33  ;;  %v1968_v17 = vpop.f32.mrf.mxu1  ;;  %v2058_v18 = vpack.c.bf16 %v2052_v13, %v2050_v11  ;;  %v2059_v47 = vpack.c.bf16 %v2056_v14, %v2054_v44 }
 0x308   :  { %v2057_v46 = vpack.c.bf16 %v2048_v15, %v2046_v45  ;;  %v2814_v38 = vpop.f32.mrf.mxu0 }
 0x309   :  { %v1969_v48 = vadd.f32 %v1968_v17, %v1904_v16  ;;  %v2815_v19 = vadd.f32 %v2814_v38, %v2813_v12  ;;  %v2965_v20 = vpop.f32.mrf.mxu1  ;;  %2306 = vmatprep.mubr.bf16.mxu0 %v2058_v18  ;;  %2982 = vmatprep.mubr.bf16.mxu1 %v2059_v47 }
 0x30a   :  { %v2816_v21 = vpop.f32.mrf.mxu0  ;;  %2307 = vmatmul.mubr.bf16.vlgmr.msra.gmra.mxu0 %v2057_v46 }
 0x30b   :  { %vm1987_vm10 = vcmp.ge.f32.partialorder %v1969_v48, 0.0  ;;  %v2002_v49 = vmul.f32 %v3639_v32, %v1969_v48  ;;  %v1907_v22 = vadd.f32 %v2815_v19, %v3633_v33  ;;  %v1971_v23 = vpop.f32.mrf.mxu1 }
 0x30c   :  { %v2817_v24 = vpop.f32.mrf.mxu0 }
 0x30d   :  { %v2010_v25 = vsel %vm1987_vm10, %v1969_v48, %v2002_v49  ;;  %v1972_v50 = vadd.f32 %v1971_v23, %v1907_v22  ;;  %v2818_v51 = vadd.f32 %v2817_v24, %v2816_v21 }
 0x30e   :  { %2042 = vst [vmem:[#allocation4 + $0x31] sm:$0xff] %v2010_v25  ;;  %v2819_v26 = vpop.f32.mrf.mxu0 }
 0x30f   :  { %vm1988_vm11 = vcmp.ge.f32.partialorder %v1972_v50, 0.0  ;;  %v2003_v27 = vmul.f32 %v3639_v32, %v1972_v50  ;;  %v1912_v28 = vadd.f32 %v2818_v51, %v3633_v33 }
 0x310   :  { %v2820_v41 = vpop.f32.mrf.mxu0 }
 0x311   :  { %v2011_v29 = vsel %vm1988_vm11, %v1972_v50, %v2003_v27  ;;  %v1977_v34 = vadd.f32 %v2964_v4, %v1912_v28 }
 0x312   :  { %2043 = vst [vmem:[#allocation4 + $0x39] sm:$0xff] %v2011_v29 }
 0x313   :  { %vm1989_vm12 = vcmp.ge.f32.partialorder %v1977_v34, 0.0  ;;  %v2004_v35 = vmul.f32 %v3639_v32, %v1977_v34 }
 0x315   :  { %v2012_v37 = vsel %vm1989_vm12, %v1977_v34, %v2004_v35 }
 0x316   :  { %v2040_v42 = vsel %vm2016_vm9, %v2012_v37, 0.0 }
 0x317   :  { %2044 = vst [vmem:[#allocation4 + $0x41] sm:$0xff] %v2040_v42 }
 0x319   :  { %v2065_v31 = vld [vmem:[#allocation4 + $0x31] ss:$2 sm:$0xff]  ;;  %v2069_v30 = vld [vmem:[#allocation4 + $0x32] ss:$2 sm:$0xff] }
 0x31a   :  { %v2061_v56 = vld [vmem:[#allocation4 + $0x30] ss:$2 sm:$0xff] }
 0x31e   :  { %v2067_v57 = vld [vmem:[#allocation4 + $0x41] ss:$2 sm:$0xff]  ;;  %v2071_v58 = vld [vmem:[#allocation4 + $0x42] ss:$2 sm:$0xff] }
 0x31f   :  { %v2063_v59 = vld [vmem:[#allocation4 + $0x40] ss:$2 sm:$0xff]  ;;  %v2073_v53 = vpack.c.bf16 %v2067_v57, %v2065_v31  ;;  %v2074_v54 = vpack.c.bf16 %v2071_v58, %v2069_v30 }
 0x320   :  { %v2072_v33 = vpack.c.bf16 %v2063_v59, %v2061_v56 }
 0x321   :  { %2314 = vmatprep.mubr.bf16.mxu0 %v2073_v53  ;;  %2983 = vmatmul.mubr.bf16.vlgmr.msra.gmra.mxu1 %v2074_v54 }
 0x322   :  { %2315 = vmatmul.mubr.bf16.gmra.mxu0 %v2072_v33 }
 0x3ca   :  { %v2850_v55 = vpop.f32.mrf.mxu0 }
 0x3cc   :  { %v2851_v61 = vpop.f32.mrf.mxu0 }
 0x3cd   :  { %v2852_v32 = vadd.f32 %v2851_v61, %v2850_v55 }
 0x3ce   :  { %v2853_v36 = vpop.f32.mrf.mxu0 }
 0x3cf   :  { %v2309_v2 = vadd.f32 %v2852_v32, %v2609_v63 }
 0x3d0   :  { %v2854_v62 = vpop.f32.mrf.mxu0 }
 0x3d1   :  { %v2855_v60 = vadd.f32 %v2854_v62, %v2853_v36 }
 0x3d3   :  { %v2312_v8 = vadd.f32 %v2855_v60, %v2609_v63 }
 0x3e1   :  { %v2984_v0 = vpop.f32.mrf.mxu1 }
 0x3e2   :  { %v2856_v1 = vpop.f32.mrf.mxu0 }
 0x3e3   :  { %v2357_v3 = vpop.f32.mrf.mxu1 }
 0x3e4   :  { %v2358_v43 = vadd.f32 %v2357_v3, %v2309_v2  ;;  %v2857_v5 = vpop.f32.mrf.mxu0 }
 0x3e5   :  { %v2858_v39 = vadd.f32 %v2857_v5, %v2856_v1  ;;  %v2985_v6 = vpop.f32.mrf.mxu1 }
 0x3e6   :  { %v2859_v7 = vpop.f32.mrf.mxu0  ;;  %vm2372_vm13 = vcmp.ge.f32.partialorder %v2358_v43, 0.0  ;;  %v2383_v52 = vmul.f32 %v2634_v40, %v2358_v43 }
 0x3e7   :  { %v2317_v9 = vadd.f32 %v2858_v39, %v2609_v63  ;;  %v2360_v10 = vpop.f32.mrf.mxu1 }
 0x3e8   :  { %v2361_v4 = vadd.f32 %v2360_v10, %v2312_v8  ;;  %v2860_v11 = vpop.f32.mrf.mxu0  ;;  %v2387_v44 = vsel %vm2372_vm13, %v2358_v43, %v2383_v52 }
 0x3e9   :  { %v2861_v45 = vadd.f32 %v2860_v11, %v2859_v7  ;;  %2391 = vxpose.xlu0.b32.start [1/2] (short) (narrow) %v2387_v44, 64  ;;  %v2366_v12 = vadd.f32 %v2984_v0, %v2317_v9 }
 0x3ea   :  { %vm2373_vm14 = vcmp.ge.f32.partialorder %v2361_v4, 0.0  ;;  %v2384_v13 = vmul.f32 %v2634_v40, %v2361_v4 }
 0x3eb   :  { %v2320_v14 = vadd.f32 %v2861_v45, %v2609_v63  ;;  %vm2374_vm15 = vcmp.ge.f32.partialorder %v2366_v12, 0.0  ;;  %v2385_v15 = vmul.f32 %v2634_v40, %v2366_v12 }
 0x3ec   :  { %v2388_v16 = vsel %vm2373_vm14, %v2361_v4, %v2384_v13 }
 0x3ed   :  { %v2369_v17 = vadd.f32 %v2985_v6, %v2320_v14  ;;  %2392 = vxpose.xlu0.b32.end [2/2] (short) (narrow) %v2388_v16, 64  ;;  %v2389_v18 = vsel %vm2374_vm15, %v2366_v12, %v2385_v15 }
 0x3ee   :  { %2431 = vxpose.xlu1.b32.start [1/2] (short) (narrow) %v2389_v18, 64 }
 0x3ef   :  { %vm2375_vm1 = vcmp.ge.f32.partialorder %v2369_v17, 0.0  ;;  %v2386_v47 = vmul.f32 %v2634_v40, %v2369_v17 }
 0x3f1   :  { %v2390_v46 = vsel %vm2375_vm1, %v2369_v17, %v2386_v47 }
 0x3f2   :  { %2432 = vxpose.xlu1.b32.end [2/2] (short) (narrow) %v2390_v46, 64 }
 0x465   :  { %v2407_v38 = vpop.trf.xlu0 }
 0x466   :  { %2423 = vst.msk [vmem:[%s3737_s13] sm:$0xff] %vm229_vm0, %v2407_v38 }
 0x469   :  { %v2408_v48 = vpop.trf.xlu0 }
 0x46a   :  { %v2447_v19 = vpop.trf.xlu1  ;;  %2424 = vst.msk [vmem:[%s3737_s13 + $0x8] sm:$0xff] %vm229_vm0, %v2408_v48 }
 0x46b   :  { %2635 = vst.msk [vmem:[%s3737_s13 + $0x40] sm:$0xff] %vm229_vm0, %v2447_v19 }
 0x46d   :  { %v2409_v20 = vpop.trf.xlu0 }
 0x46e   :  { %v2448_v21 = vpop.trf.xlu1  ;;  %2425 = vst.msk [vmem:[%s3737_s13 + $0x10] sm:$0xff] %vm229_vm0, %v2409_v20 }
 0x46f   :  { %2636 = vst.msk [vmem:[%s3737_s13 + $0x48] sm:$0xff] %vm229_vm0, %v2448_v21 }
 0x471   :  { %v2410_v49 = vpop.trf.xlu0 }
 0x472   :  { %v2449_v22 = vpop.trf.xlu1  ;;  %2426 = vst.msk [vmem:[%s3737_s13 + $0x18] sm:$0xff] %vm229_vm0, %v2410_v49 }
 0x473   :  { %2637 = vst.msk [vmem:[%s3737_s13 + $0x50] sm:$0xff] %vm229_vm0, %v2449_v22 }
 0x475   :  { %v2411_v23 = vpop.trf.xlu0 }
 0x476   :  { %v2450_v24 = vpop.trf.xlu1  ;;  %2427 = vst.msk [vmem:[%s3737_s13 + $0x20] sm:$0xff] %vm229_vm0, %v2411_v23 }
 0x477   :  { %2638 = vst.msk [vmem:[%s3737_s13 + $0x58] sm:$0xff] %vm229_vm0, %v2450_v24 }
 0x479   :  { %v2412_v25 = vpop.trf.xlu0 }
 0x47a   :  { %v2451_v50 = vpop.trf.xlu1  ;;  %2428 = vst.msk [vmem:[%s3737_s13 + $0x28] sm:$0xff] %vm229_vm0, %v2412_v25 }
 0x47b   :  { %2639 = vst.msk [vmem:[%s3737_s13 + $0x60] sm:$0xff] %vm229_vm0, %v2451_v50 }
 0x47d   :  { %v2413_v51 = vpop.trf.xlu0 }
 0x47e   :  { %v2452_v26 = vpop.trf.xlu1  ;;  %2429 = vst.msk [vmem:[%s3737_s13 + $0x30] sm:$0xff] %vm229_vm0, %v2413_v51 }
 0x47f   :  { %2640 = vst.msk [vmem:[%s3737_s13 + $0x68] sm:$0xff] %vm229_vm0, %v2452_v26 }
 0x481   :  { %v2414_v27 = vpop.trf.xlu0 }
 0x482   :  { %v2453_v28 = vpop.trf.xlu1  ;;  %2430 = vst.msk [vmem:[%s3737_s13 + $0x38] sm:$0xff] %vm229_vm0, %v2414_v27 }
 0x483   :  { %2641 = vst.msk [vmem:[%s3737_s13 + $0x70] sm:$0xff] %vm229_vm0, %v2453_v28 }
 0x486   :  { %v2454_v41 = vpop.trf.xlu1 }
 0x487   :  { %2642 = vst.msk [vmem:[%s3737_s13 + $0x78] sm:$0xff] %vm229_vm0, %v2454_v41 }
 0x488   :  { %2476 = vsyncpa [#allocation6], 1 }
 0x489   :  { %2477 = vsyncpa [#allocation8], 1 }

</bundles_post_ra>
